<compile_context>
chip_gen: v7x
topology: tpu7x:2x2x1
jax: 0.10.0
libtpu: 0.0.40
codegen_flags: <defaults>
</compile_context>

<pallas_src>
import math

import jax
import jax.numpy as jnp
import numpy as np
from jax.experimental import pallas as pl
from jax.experimental.pallas import tpu as pltpu


_HW_CACHE = None


def _tpu_hw_info():
    """Trace-time hardware facts used for tiling decisions (cached)."""
    global _HW_CACHE
    if _HW_CACHE is not None:
        return _HW_CACHE
    kind = ""
    try:
        kind = jax.devices()[0].device_kind.lower()
    except Exception:
        pass
    is_v7 = ("v7" in kind) or ("7x" in kind)
    pre_v6 = any(t in kind for t in ("v2", "v3", "v4", "v5"))
    vmem = None
    try:
        vmem = int(pltpu.get_tpu_info().vmem_capacity_bytes)
    except Exception:
        vmem = None
    if vmem is None:
        if is_v7:
            vmem = 64 << 20          # v7x: 64 MiB per TC
        elif ("v2" in kind) or ("v3" in kind):
            vmem = 16 << 20
        else:
            vmem = 128 << 20         # v5e / v6e / v4
    _HW_CACHE = {"multi_tc": is_v7, "bf16_eup": not pre_v6, "vmem_bytes": vmem}
    return _HW_CACHE


def _pick_batch_block(N, L, E, H, has_pos, hw):
    """Batch elements per grid step.

    Constraints: nb divides N and (nb == N or nb % 8 == 0) so the (L, nb, E) block obeys the
    (8,128)/full-dim rule.  Budget derived from the chip's VMEM capacity (double-buffered
    in/pos/out blocks + f32/bf16 intermediates + (nb*H, L, L) scores).  On v7x we prefer a
    split that leaves >= 2 grid steps (two TensorCores); on v5e/v6e a grid of 1 is best.
    Returns (nb, vmem_limit_bytes).
    """
    blocks = (2 + (2 if has_pos else 0) + 2) * L * E * 4          # in/pos/out, x2 buffers
    interm = 12 * L * E * 4 + 3 * L * E * 2 + 6 * H * L * L       # proj f32, bf16 heads, scores
    per_b = blocks + interm
    const_b = 4 * E * E * 2 + 16 * E * 4 + 4096                   # bf16 weights + small biases
    vmem_limit = min(int(0.70 * hw["vmem_bytes"]), 96 << 20)
    budget = max(int(0.6 * max(vmem_limit - const_b - (1 << 20), per_b)), per_b)
    cap = max(1, budget // per_b)

    valid = [d for d in range(1, N + 1)
             if N % d == 0 and (d == N or d % 8 == 0)]
    fits = [d for d in valid if d <= cap] or [min(valid)]
    if hw["multi_tc"]:
        two_step = [d for d in fits if N // d >= 2]
        if two_step:
            return max(two_step), vmem_limit
    return max(fits), vmem_limit


def _make_self_attn_layer_kernel(nheads, pre_norm, has_pos, fused_qk, exp_bf16,
                                 nb, seq_len, emb, eps: float = 1e-5):
    """One SelfAttentionLayer for a (L, nb, E) block of `nb` batch elements (seq-first)."""
    H, E, L = nheads, emb, seq_len
    Dh = E // H
    T = nb * L   # tokens per grid step (token index = l * nb + n)

    def kernel(*refs):
        it = iter(refs)
        x_ref = next(it)
        pos_ref = next(it) if has_pos else None
        if fused_qk:
            w_qk_ref, w_v_ref, b_qk_ref, b_v_ref = next(it), next(it), next(it), next(it)
        else:
            w_q_ref, w_k_ref, w_v_ref = next(it), next(it), next(it)
            b_q_ref, b_k_ref, b_v_ref = next(it), next(it), next(it)
        w_out_ref, b_out_ref = next(it), next(it)
        gamma_ref, beta_ref = next(it), next(it)
        o_ref = next(it)

        x2 = x_ref[...].reshape(T, E)        # free leading-dim merge, f32
        gamma = gamma_ref[...]               # (1, E)
        beta = beta_ref[...]                 # (1, E)

        def layer_norm(y):
            mean = jnp.mean(y, axis=-1, keepdims=True)
            var = jnp.mean((y - mean) ** 2, axis=-1, keepdims=True)
            return (y - mean) * jax.lax.rsqrt(var + eps) * gamma + beta

        src2 = layer_norm(x2) if pre_norm else x2
        if has_pos:
            qk_in = src2 + pos_ref[...].reshape(T, E)     # with_pos_embed
        else:
            qk_in = src2

        # bf16 MXU operands, f32 accumulation, f32 bias add.
        def proj(a_bf16, w_ref, b_ref):
            y = jax.lax.dot_general(a_bf16, w_ref[...],
                                    (((1,), (1,)), ((), ())),
                                    preferred_element_type=jnp.float32)
            return y + b_ref[...]

        qk_in_bf = qk_in.astype(jnp.bfloat16)
        src_bf = qk_in_bf if (qk_in is src2) else src2.astype(jnp.bfloat16)

        if fused_qk:
            qk = proj(qk_in_bf, w_qk_ref, b_qk_ref)   # (T, 2E); E % 128 == 0 -> aligned split
            q, k = qk[:, :E], qk[:, E:]
        else:
            q = proj(qk_in_bf, w_q_ref, b_q_ref)      # scale folded into W_q / b_q
            k = proj(qk_in_bf, w_k_ref, b_k_ref)
        v = proj(src_bf, w_v_ref, b_v_ref)

        # (T, E) -> (nb*H, L, Dh): ONE transpose does both the head split and the
        # seq-first -> batch-first swap; lane (last) dim stays put.
        def to_heads(t2d):
            t4 = t2d.astype(jnp.bfloat16).reshape(L, nb, H, Dh)
            return jnp.transpose(t4, (1, 2, 0, 3)).reshape(nb * H, L, Dh)

        qh, kh, vh = to_heads(q), to_heads(k), to_heads(v)

        # Scaled dot-product attention, batched over (nb * H).
        s = jnp.einsum('bqd,bkd->bqk', qh, kh,
                       preferred_element_type=jnp.float32)          # (nb*H, L, L) f32
        m = jnp.max(s, axis=-1, keepdims=True)
        if exp_bf16:
            p = jnp.exp((s - m).astype(jnp.bfloat16))                # bf16 EUP (v6e/v7x)
        else:
            p = jnp.exp(s - m).astype(jnp.bfloat16)                  # f32 EUP (v5e), then cast
        l = jnp.sum(p, axis=-1, keepdims=True, dtype=jnp.float32)    # row-sum in f32
        ctx = jnp.einsum('bqk,bkd->bqd', p, vh,
                         preferred_element_type=jnp.float32)         # (nb*H, L, Dh) f32
        ctx = ctx * pl.reciprocal(l, approx=True)                    # normalize after PV

        # Back to seq-first token order (T, E) and output projection.
        ctx2 = jnp.transpose(ctx.reshape(nb, H, L, Dh), (2, 0, 1, 3)).reshape(T, E)
        attn = jax.lax.dot_general(ctx2.astype(jnp.bfloat16), w_out_ref[...],
                                   (((1,), (1,)), ((), ())),
                                   preferred_element_type=jnp.float32)
        attn = attn + b_out_ref[...]

        y = x2 + attn                           # dropout=0.0 -> identity
        if not pre_norm:
            y = layer_norm(y)
        o_ref[...] = y.reshape(L, nb, E).astype(o_ref.dtype)

    return kernel


def self_attention_layer_pallas(x_lne, query_pos_lne, kparams, nheads, pre_norm):
    """x_lne, query_pos_lne: (L, N, E) seq-first like PyTorch; returns (L, N, E).

    No wrapper transposes: the seq-first layout is blocked directly.
    """
    L, N, E = x_lne.shape
    assert E % nheads == 0
    has_pos = query_pos_lne is not None
    fused_qk = (E % 128 == 0)
    hw = _tpu_hw_info()
    nb, vmem_limit = _pick_batch_block(N, L, E, nheads, has_pos, hw)

    inputs = [x_lne]
    if has_pos:
        inputs.append(query_pos_lne)
    inputs += list(kparams)

    kernel = _make_self_attn_layer_kernel(nheads, pre_norm, has_pos, fused_qk,
                                          hw["bf16_eup"], nb, L, E)

    data_spec = pl.BlockSpec((L, nb, E), lambda b: (0, b, 0))

    in_specs = [data_spec]
    if has_pos:
        in_specs.append(data_spec)
    # Constant (grid-invariant) weights/biases: full-array blocks, constant index_map.
    in_specs += [pl.BlockSpec(p.shape, lambda b: (0, 0)) for p in kparams]

    out = pl.pallas_call(
        kernel,
        out_shape=jax.ShapeDtypeStruct((L, N, E), jnp.float32),
        grid_spec=pltpu.PrefetchScalarGridSpec(
            num_scalar_prefetch=0,
            grid=(N // nb,),
            in_specs=in_specs,
            out_specs=data_spec,
        ),
        compiler_params=pltpu.CompilerParams(
            dimension_semantics=("parallel",),
            vmem_limit_bytes=int(vmem_limit),
        ),
    )(*inputs)
    return out


class ConditionAttentionPallas:
    """JAX/Pallas port of ConditionAttention: list of SelfAttentionLayers, dispatch by layer_id."""

    def __init__(self, num_layers, hidden_dim, nheads, pre_norm, key):
        self.nheads = nheads
        self.pre_norm = pre_norm
        self.hidden_dim = hidden_dim
        self.params = []          # PyTorch-style f32 params (for reference checking)
        self.kernel_params = []   # kernel-ready: scale-folded bf16 weights, 2-D f32 biases
        E = hidden_dim
        scale = 1.0 / math.sqrt(E // nheads)
        fused_qk = (E % 128 == 0)
        for i in range(num_layers):
            k = jax.random.fold_in(key, i)
            k1, k2, k3, k4 = jax.random.split(k, 4)
            w_in = 0.05 * jax.random.normal(k1, (3 * E, E), jnp.float32)   # in_proj_weight
            b_in = 0.05 * jax.random.normal(k2, (3 * E,), jnp.float32)     # in_proj_bias
            w_out = 0.05 * jax.random.normal(k3, (E, E), jnp.float32)      # out_proj.weight
            b_out = 0.05 * jax.random.normal(k4, (E,), jnp.float32)        # out_proj.bias
            gamma = jnp.ones((E,), jnp.float32)                            # LayerNorm.weight
            beta = jnp.zeros((E,), jnp.float32)                            # LayerNorm.bias
            self.params.append((w_in, b_in, w_out, b_out, gamma, beta))

            w_q = (w_in[:E] * scale).astype(jnp.bfloat16)          # 1/sqrt(Dh) folded in
            b_q = (b_in[:E] * scale).reshape(1, E)
            w_k = w_in[E:2 * E].astype(jnp.bfloat16)
            b_k = b_in[E:2 * E].reshape(1, E)
            w_v = w_in[2 * E:].astype(jnp.bfloat16)
            b_v = b_in[2 * E:].reshape(1, E)
            common = (w_out.astype(jnp.bfloat16), b_out.reshape(1, E),
                      gamma.reshape(1, E), beta.reshape(1, E))
            if fused_qk:
                self.kernel_params.append((
                    jnp.concatenate([w_q, w_k], axis=0),           # (2E, E) bf16
                    w_v,
                    jnp.concatenate([b_q, b_k], axis=1),           # (1, 2E)
                    b_v,
                ) + common)
            else:
                self.kernel_params.append((w_q, w_k, w_v, b_q, b_k, b_v) + common)

    def __call__(self, layer_id, output, tgt_mask=None, tgt_key_padding_mask=None,
                 query_pos=None):
        # TODO(synk): tgt_mask / tgt_key_padding_mask not implemented (only the None path,
        # which is how this module is typically called).
        assert tgt_mask is None and tgt_key_padding_mask is None
        return self_attention_layer_pallas(output, query_pos,
                                           self.kernel_params[layer_id],
                                           self.nheads, self.pre_norm)


def _reference_layer(x_lne, pos_lne, params, nheads, pre_norm, eps=1e-5):
    """Pure-JAX f32 reference mirroring PyTorch SelfAttentionLayer + nn.MultiheadAttention."""
    w_in, b_in, w_out, b_out, gamma, beta = params
    L, N, E = x_lne.shape
    H = nheads
    Dh = E // H

    def ln(y):
        m = y.mean(-1, keepdims=True)
        v = ((y - m) ** 2).mean(-1, keepdims=True)
        return (y - m) / jnp.sqrt(v + eps) * gamma + beta

    src = ln(x_lne) if pre_norm else x_lne
    qk = src + (pos_lne if pos_lne is not None else 0.0)
    q = qk @ w_in[:E].T + b_in[:E]
    k = qk @ w_in[E:2 * E].T + b_in[E:2 * E]
    v = src @ w_in[2 * E:].T + b_in[2 * E:]
    qh = q.reshape(L, N, H, Dh)
    kh = k.reshape(L, N, H, Dh)
    vh = v.reshape(L, N, H, Dh)
    s = jnp.einsum('qnhd,knhd->nhqk', qh, kh) / math.sqrt(Dh)
    p = jax.nn.softmax(s, axis=-1)
    ctx = jnp.einsum('nhqk,knhd->qnhd', p, vh).reshape(L, N, E)
    attn_out = ctx @ w_out.T + b_out
    y = x_lne + attn_out
    return y if pre_norm else ln(y)


if __name__ == "__main__":
    key = jax.random.PRNGKey(0)
    L, N, E, H = 8, 2, 32, 4        # seq=8, batch=2, hidden=32, heads=4
    num_layers = 2

    k_x, k_pos, k_params = jax.random.split(key, 3)
    output = jax.random.normal(k_x, (L, N, E), jnp.float32)       # (L, N, E) seq-first
    query_pos = jax.random.normal(k_pos, (L, N, E), jnp.float32)

    # Tolerances loosened vs a pure-f32 path: bf16 matmul operands (f32 accumulate), bf16
    # softmax exponent on v6e/v7x, and pl.reciprocal(approx=True) in the normalization.
    TOL = dict(atol=4e-2, rtol=4e-2)

    # 1) post-norm layer with query_pos
    model = ConditionAttentionPallas(num_layers, E, H, pre_norm=False, key=k_params)
    out = jax.block_until_ready(model(1, output, query_pos=query_pos))
    ref = _reference_layer(output, query_pos, model.params[1], H, pre_norm=False)
    np.testing.assert_allclose(np.asarray(out), np.asarray(ref), **TOL)

    # 2) pre-norm layer with query_pos=None (specialized kernel: no pos input DMA'd)
    model_pre = ConditionAttentionPallas(num_layers, E, H, pre_norm=True, key=k_params)
    out2 = jax.block_until_ready(model_pre(0, output, query_pos=None))
    ref2 = _reference_layer(output, None, model_pre.params[0], H, pre_norm=True)
    np.testing.assert_allclose(np.asarray(out2), np.asarray(ref2), **TOL)

    print("KERNEL_OK")
</pallas_src>

<mosaic_0001>
module attributes {stable_mosaic.version = 11 : i64} {
  func.func @kernel(%arg0: i32, %arg1: memref<8x2x32xf32, #tpu.memory_space<vmem>>, %arg2: memref<8x2x32xf32, #tpu.memory_space<vmem>>, %arg3: memref<32x32xbf16, #tpu.memory_space<vmem>>, %arg4: memref<32x32xbf16, #tpu.memory_space<vmem>>, %arg5: memref<32x32xbf16, #tpu.memory_space<vmem>>, %arg6: memref<1x32xf32, #tpu.memory_space<vmem>>, %arg7: memref<1x32xf32, #tpu.memory_space<vmem>>, %arg8: memref<1x32xf32, #tpu.memory_space<vmem>>, %arg9: memref<32x32xbf16, #tpu.memory_space<vmem>>, %arg10: memref<1x32xf32, #tpu.memory_space<vmem>>, %arg11: memref<1x32xf32, #tpu.memory_space<vmem>>, %arg12: memref<1x32xf32, #tpu.memory_space<vmem>>, %arg13: memref<8x2x32xf32, #tpu.memory_space<vmem>>) attributes {dimension_semantics = [#tpu.dimension_semantics<parallel>], iteration_bounds = array<i64: 1>, scalar_prefetch = 0 : i64, scratch_operands = 0 : i64, tpu.core_type = #tpu.core_type<tc>, window_params = [{transform_indices = @transform_0, window_bounds = array<i64: 8, 2, 32>}, {transform_indices = @transform_1, window_bounds = array<i64: 8, 2, 32>}, {pipeline_mode = #tpu.pipeline_mode<synchronous>, transform_indices = @transform_2, window_bounds = array<i64: 32, 32>}, {pipeline_mode = #tpu.pipeline_mode<synchronous>, transform_indices = @transform_3, window_bounds = array<i64: 32, 32>}, {pipeline_mode = #tpu.pipeline_mode<synchronous>, transform_indices = @transform_4, window_bounds = array<i64: 32, 32>}, {pipeline_mode = #tpu.pipeline_mode<synchronous>, transform_indices = @transform_5, window_bounds = array<i64: 1, 32>}, {pipeline_mode = #tpu.pipeline_mode<synchronous>, transform_indices = @transform_6, window_bounds = array<i64: 1, 32>}, {pipeline_mode = #tpu.pipeline_mode<synchronous>, transform_indices = @transform_7, window_bounds = array<i64: 1, 32>}, {pipeline_mode = #tpu.pipeline_mode<synchronous>, transform_indices = @transform_8, window_bounds = array<i64: 32, 32>}, {pipeline_mode = #tpu.pipeline_mode<synchronous>, transform_indices = @transform_9, window_bounds = array<i64: 1, 32>}, {pipeline_mode = #tpu.pipeline_mode<synchronous>, transform_indices = @transform_10, window_bounds = array<i64: 1, 32>}, {pipeline_mode = #tpu.pipeline_mode<synchronous>, transform_indices = @transform_11, window_bounds = array<i64: 1, 32>}, {transform_indices = @transform_12, window_bounds = array<i64: 8, 2, 32>}]} {
    %c0 = arith.constant 0 : index
    %c0_0 = arith.constant 0 : index
    %c0_1 = arith.constant 0 : index
    %0 = vector.load %arg1[%c0, %c0_0, %c0_1] : memref<8x2x32xf32, #tpu.memory_space<vmem>>, vector<8x2x32xf32>
    %1 = vector.shape_cast %0 : vector<8x2x32xf32> to vector<16x32xf32>
    %c0_2 = arith.constant 0 : index
    %c0_3 = arith.constant 0 : index
    %2 = vector.load %arg11[%c0_2, %c0_3] : memref<1x32xf32, #tpu.memory_space<vmem>>, vector<1x32xf32>
    %c0_4 = arith.constant 0 : index
    %c0_5 = arith.constant 0 : index
    %3 = vector.load %arg12[%c0_4, %c0_5] : memref<1x32xf32, #tpu.memory_space<vmem>>, vector<1x32xf32>
    %c0_6 = arith.constant 0 : index
    %c0_7 = arith.constant 0 : index
    %c0_8 = arith.constant 0 : index
    %4 = vector.load %arg2[%c0_6, %c0_7, %c0_8] : memref<8x2x32xf32, #tpu.memory_space<vmem>>, vector<8x2x32xf32>
    %5 = vector.shape_cast %4 : vector<8x2x32xf32> to vector<16x32xf32>
    %6 = arith.addf %1, %5 : vector<16x32xf32>
    %7 = arith.truncf %6 : vector<16x32xf32> to vector<16x32xbf16>
    %8 = arith.truncf %1 : vector<16x32xf32> to vector<16x32xbf16>
    %c0_9 = arith.constant 0 : index
    %c0_10 = arith.constant 0 : index
    %9 = vector.load %arg3[%c0_9, %c0_10] : memref<32x32xbf16, #tpu.memory_space<vmem>>, vector<32x32xbf16>
    %cst = arith.constant dense<0.000000e+00> : vector<16x32xf32>
    %10 = tpu.matmul %7, %9, %cst {dimension_numbers = #tpu.dot_dimension_numbers<[1], [1], [0], [0], [0, 0, 1, 0], [], []>} : vector<16x32xbf16>, vector<32x32xbf16>, vector<16x32xf32> -> vector<16x32xf32>
    %c0_11 = arith.constant 0 : index
    %c0_12 = arith.constant 0 : index
    %11 = vector.load %arg6[%c0_11, %c0_12] : memref<1x32xf32, #tpu.memory_space<vmem>>, vector<1x32xf32>
    %12 = vector.broadcast %11 : vector<1x32xf32> to vector<16x32xf32>
    %13 = arith.addf %10, %12 : vector<16x32xf32>
    %c0_13 = arith.constant 0 : index
    %c0_14 = arith.constant 0 : index
    %14 = vector.load %arg4[%c0_13, %c0_14] : memref<32x32xbf16, #tpu.memory_space<vmem>>, vector<32x32xbf16>
    %cst_15 = arith.constant dense<0.000000e+00> : vector<16x32xf32>
    %15 = tpu.matmul %7, %14, %cst_15 {dimension_numbers = #tpu.dot_dimension_numbers<[1], [1], [0], [0], [0, 0, 1, 0], [], []>} : vector<16x32xbf16>, vector<32x32xbf16>, vector<16x32xf32> -> vector<16x32xf32>
    %c0_16 = arith.constant 0 : index
    %c0_17 = arith.constant 0 : index
    %16 = vector.load %arg7[%c0_16, %c0_17] : memref<1x32xf32, #tpu.memory_space<vmem>>, vector<1x32xf32>
    %17 = vector.broadcast %16 : vector<1x32xf32> to vector<16x32xf32>
    %18 = arith.addf %15, %17 : vector<16x32xf32>
    %c0_18 = arith.constant 0 : index
    %c0_19 = arith.constant 0 : index
    %19 = vector.load %arg5[%c0_18, %c0_19] : memref<32x32xbf16, #tpu.memory_space<vmem>>, vector<32x32xbf16>
    %cst_20 = arith.constant dense<0.000000e+00> : vector<16x32xf32>
    %20 = tpu.matmul %8, %19, %cst_20 {dimension_numbers = #tpu.dot_dimension_numbers<[1], [1], [0], [0], [0, 0, 1, 0], [], []>} : vector<16x32xbf16>, vector<32x32xbf16>, vector<16x32xf32> -> vector<16x32xf32>
    %c0_21 = arith.constant 0 : index
    %c0_22 = arith.constant 0 : index
    %21 = vector.load %arg8[%c0_21, %c0_22] : memref<1x32xf32, #tpu.memory_space<vmem>>, vector<1x32xf32>
    %22 = vector.broadcast %21 : vector<1x32xf32> to vector<16x32xf32>
    %23 = arith.addf %20, %22 : vector<16x32xf32>
    %24 = arith.truncf %13 : vector<16x32xf32> to vector<16x32xbf16>
    %25 = vector.shape_cast %24 : vector<16x32xbf16> to vector<8x2x4x8xbf16>
    %26 = tpu.transpose %25, [1, 2, 0, 3] : vector<8x2x4x8xbf16> -> vector<2x4x8x8xbf16>
    %27 = vector.shape_cast %26 : vector<2x4x8x8xbf16> to vector<8x8x8xbf16>
    %28 = arith.truncf %18 : vector<16x32xf32> to vector<16x32xbf16>
    %29 = vector.shape_cast %28 : vector<16x32xbf16> to vector<8x2x4x8xbf16>
    %30 = tpu.transpose %29, [1, 2, 0, 3] : vector<8x2x4x8xbf16> -> vector<2x4x8x8xbf16>
    %31 = vector.shape_cast %30 : vector<2x4x8x8xbf16> to vector<8x8x8xbf16>
    %32 = arith.truncf %23 : vector<16x32xf32> to vector<16x32xbf16>
    %33 = vector.shape_cast %32 : vector<16x32xbf16> to vector<8x2x4x8xbf16>
    %34 = tpu.transpose %33, [1, 2, 0, 3] : vector<8x2x4x8xbf16> -> vector<2x4x8x8xbf16>
    %35 = vector.shape_cast %34 : vector<2x4x8x8xbf16> to vector<8x8x8xbf16>
    "tpu.trace_start"() <{level = 10 : i32, message = "bqd,bkd->bqk"}> : () -> ()
    %cst_23 = arith.constant dense<0.000000e+00> : vector<8x8x8xf32>
    %36 = tpu.matmul %27, %31, %cst_23 {dimension_numbers = #tpu.dot_dimension_numbers<[2], [2], [1], [1], [0, 0, 0, 1, 1, 1], [0], [0]>} : vector<8x8x8xbf16>, vector<8x8x8xbf16>, vector<8x8x8xf32> -> vector<8x8x8xf32>
    "tpu.trace_stop"() : () -> ()
    %cst_24 = arith.constant dense<0xFF800000> : vector<8x8xf32>
    %37 = vector.multi_reduction <maximumf>, %36, %cst_24 [2] : vector<8x8x8xf32> to vector<8x8xf32>
    %38 = vector.shape_cast %37 : vector<8x8xf32> to vector<8x8x1xf32>
    %39 = vector.broadcast %38 : vector<8x8x1xf32> to vector<8x8x8xf32>
    %40 = arith.subf %36, %39 : vector<8x8x8xf32>
    %41 = arith.truncf %40 : vector<8x8x8xf32> to vector<8x8x8xbf16>
    %42 = math.exp %41 : vector<8x8x8xbf16>
    %43 = arith.extf %42 : vector<8x8x8xbf16> to vector<8x8x8xf32>
    %cst_25 = arith.constant dense<0.000000e+00> : vector<8x8xf32>
    %44 = vector.multi_reduction <add>, %43, %cst_25 [2] : vector<8x8x8xf32> to vector<8x8xf32>
    %45 = vector.shape_cast %44 : vector<8x8xf32> to vector<8x8x1xf32>
    "tpu.trace_start"() <{level = 10 : i32, message = "bqk,bkd->bqd"}> : () -> ()
    %cst_26 = arith.constant dense<0.000000e+00> : vector<8x8x8xf32>
    %46 = tpu.matmul %42, %35, %cst_26 {dimension_numbers = #tpu.dot_dimension_numbers<[2], [1], [1], [2], [0, 0, 0, 1, 1, 2], [0], [0]>} : vector<8x8x8xbf16>, vector<8x8x8xbf16>, vector<8x8x8xf32> -> vector<8x8x8xf32>
    "tpu.trace_stop"() : () -> ()
    %47 = tpu.reciprocal %45 {approx = true} : vector<8x8x1xf32> -> vector<8x8x1xf32>
    %48 = vector.broadcast %47 : vector<8x8x1xf32> to vector<8x8x8xf32>
    %49 = arith.mulf %46, %48 : vector<8x8x8xf32>
    %50 = vector.shape_cast %49 : vector<8x8x8xf32> to vector<2x4x8x8xf32>
    %51 = tpu.transpose %50, [2, 0, 1, 3] : vector<2x4x8x8xf32> -> vector<8x2x4x8xf32>
    %52 = vector.shape_cast %51 : vector<8x2x4x8xf32> to vector<16x32xf32>
    %53 = arith.truncf %52 : vector<16x32xf32> to vector<16x32xbf16>
    %c0_27 = arith.constant 0 : index
    %c0_28 = arith.constant 0 : index
    %54 = vector.load %arg9[%c0_27, %c0_28] : memref<32x32xbf16, #tpu.memory_space<vmem>>, vector<32x32xbf16>
    %cst_29 = arith.constant dense<0.000000e+00> : vector<16x32xf32>
    %55 = tpu.matmul %53, %54, %cst_29 {dimension_numbers = #tpu.dot_dimension_numbers<[1], [1], [0], [0], [0, 0, 1, 0], [], []>} : vector<16x32xbf16>, vector<32x32xbf16>, vector<16x32xf32> -> vector<16x32xf32>
    %c0_30 = arith.constant 0 : index
    %c0_31 = arith.constant 0 : index
    %56 = vector.load %arg10[%c0_30, %c0_31] : memref<1x32xf32, #tpu.memory_space<vmem>>, vector<1x32xf32>
    %57 = vector.broadcast %56 : vector<1x32xf32> to vector<16x32xf32>
    %58 = arith.addf %55, %57 : vector<16x32xf32>
    %59 = arith.addf %1, %58 : vector<16x32xf32>
    %cst_32 = arith.constant dense<0.000000e+00> : vector<16xf32>
    %60 = vector.multi_reduction <add>, %59, %cst_32 [1] : vector<16x32xf32> to vector<16xf32>
    %61 = vector.shape_cast %60 : vector<16xf32> to vector<16x1xf32>
    %cst_33 = arith.constant 3.200000e+01 : f32
    %62 = vector.broadcast %cst_33 : f32 to vector<16x1xf32>
    %63 = arith.divf %61, %62 : vector<16x1xf32>
    %64 = vector.broadcast %63 : vector<16x1xf32> to vector<16x32xf32>
    %65 = arith.subf %59, %64 : vector<16x32xf32>
    %66 = arith.mulf %65, %65 : vector<16x32xf32>
    %cst_34 = arith.constant dense<0.000000e+00> : vector<16xf32>
    %67 = vector.multi_reduction <add>, %66, %cst_34 [1] : vector<16x32xf32> to vector<16xf32>
    %68 = vector.shape_cast %67 : vector<16xf32> to vector<16x1xf32>
    %cst_35 = arith.constant 3.200000e+01 : f32
    %69 = vector.broadcast %cst_35 : f32 to vector<16x1xf32>
    %70 = arith.divf %68, %69 : vector<16x1xf32>
    %71 = vector.broadcast %63 : vector<16x1xf32> to vector<16x32xf32>
    %72 = arith.subf %59, %71 : vector<16x32xf32>
    %cst_36 = arith.constant 9.99999974E-6 : f32
    %73 = vector.broadcast %cst_36 : f32 to vector<16x1xf32>
    %74 = arith.addf %70, %73 : vector<16x1xf32>
    %75 = math.rsqrt %74 : vector<16x1xf32>
    %76 = vector.broadcast %75 : vector<16x1xf32> to vector<16x32xf32>
    %77 = arith.mulf %72, %76 : vector<16x32xf32>
    %78 = vector.broadcast %2 : vector<1x32xf32> to vector<16x32xf32>
    %79 = arith.mulf %77, %78 : vector<16x32xf32>
    %80 = vector.broadcast %3 : vector<1x32xf32> to vector<16x32xf32>
    %81 = arith.addf %79, %80 : vector<16x32xf32>
    %82 = vector.shape_cast %81 : vector<16x32xf32> to vector<8x2x32xf32>
    %c0_37 = arith.constant 0 : index
    %c0_38 = arith.constant 0 : index
    %c0_39 = arith.constant 0 : index
    %83 = vector.load %arg13[%c0_37, %c0_38, %c0_39] : memref<8x2x32xf32, #tpu.memory_space<vmem>>, vector<8x2x32xf32>
    tpu.vector_store %arg13[%c0_37, %c0_38, %c0_39], %82 {strides = array<i32>} : memref<8x2x32xf32, #tpu.memory_space<vmem>>, vector<8x2x32xf32>,
    return
  }
  func.func @transform_0(%arg0: i32) -> (i32, i32, i32) {
    %c0_i32 = arith.constant 0 : i32
    %c0_i32_0 = arith.constant 0 : i32
    %c0_i32_1 = arith.constant 0 : i32
    return %c0_i32, %arg0, %c0_i32_0 : i32, i32, i32
  }
  func.func @transform_1(%arg0: i32) -> (i32, i32, i32) {
    %c0_i32 = arith.constant 0 : i32
    %c0_i32_0 = arith.constant 0 : i32
    %c0_i32_1 = arith.constant 0 : i32
    return %c0_i32, %arg0, %c0_i32_0 : i32, i32, i32
  }
  func.func @transform_2(%arg0: i32) -> (i32, i32) {
    %c0_i32 = arith.constant 0 : i32
    %c0_i32_0 = arith.constant 0 : i32
    %c0_i32_1 = arith.constant 0 : i32
    return %c0_i32, %c0_i32_0 : i32, i32
  }
  func.func @transform_3(%arg0: i32) -> (i32, i32) {
    %c0_i32 = arith.constant 0 : i32
    %c0_i32_0 = arith.constant 0 : i32
    %c0_i32_1 = arith.constant 0 : i32
    return %c0_i32, %c0_i32_0 : i32, i32
  }
  func.func @transform_4(%arg0: i32) -> (i32, i32) {
    %c0_i32 = arith.constant 0 : i32
    %c0_i32_0 = arith.constant 0 : i32
    %c0_i32_1 = arith.constant 0 : i32
    return %c0_i32, %c0_i32_0 : i32, i32
  }
  func.func @transform_5(%arg0: i32) -> (i32, i32) {
    %c0_i32 = arith.constant 0 : i32
    %c0_i32_0 = arith.constant 0 : i32
    %c0_i32_1 = arith.constant 0 : i32
    return %c0_i32, %c0_i32_0 : i32, i32
  }
  func.func @transform_6(%arg0: i32) -> (i32, i32) {
    %c0_i32 = arith.constant 0 : i32
    %c0_i32_0 = arith.constant 0 : i32
    %c0_i32_1 = arith.constant 0 : i32
    return %c0_i32, %c0_i32_0 : i32, i32
  }
  func.func @transform_7(%arg0: i32) -> (i32, i32) {
    %c0_i32 = arith.constant 0 : i32
    %c0_i32_0 = arith.constant 0 : i32
    %c0_i32_1 = arith.constant 0 : i32
    return %c0_i32, %c0_i32_0 : i32, i32
  }
  func.func @transform_8(%arg0: i32) -> (i32, i32) {
    %c0_i32 = arith.constant 0 : i32
    %c0_i32_0 = arith.constant 0 : i32
    %c0_i32_1 = arith.constant 0 : i32
    return %c0_i32, %c0_i32_0 : i32, i32
  }
  func.func @transform_9(%arg0: i32) -> (i32, i32) {
    %c0_i32 = arith.constant 0 : i32
    %c0_i32_0 = arith.constant 0 : i32
    %c0_i32_1 = arith.constant 0 : i32
    return %c0_i32, %c0_i32_0 : i32, i32
  }
  func.func @transform_10(%arg0: i32) -> (i32, i32) {
    %c0_i32 = arith.constant 0 : i32
    %c0_i32_0 = arith.constant 0 : i32
    %c0_i32_1 = arith.constant 0 : i32
    return %c0_i32, %c0_i32_0 : i32, i32
  }
  func.func @transform_11(%arg0: i32) -> (i32, i32) {
    %c0_i32 = arith.constant 0 : i32
    %c0_i32_0 = arith.constant 0 : i32
    %c0_i32_1 = arith.constant 0 : i32
    return %c0_i32, %c0_i32_0 : i32, i32
  }
  func.func @transform_12(%arg0: i32) -> (i32, i32, i32) {
    %c0_i32 = arith.constant 0 : i32
    %c0_i32_0 = arith.constant 0 : i32
    %c0_i32_1 = arith.constant 0 : i32
    return %c0_i32, %arg0, %c0_i32_0 : i32, i32, i32
  }
}

</mosaic_0001>

<bundles_post_ra>
// kernel: tpu_custom_call.1
= control target key start
LH: loop header
LB: loop body
LE: loop exit
PB: predicated region body
PF: predicated region fallthrough
CT: control target
= control target key end

     0   :  { %17 = vsyncpa [#allocation3], 0  ;;  %s4295_s0 = inlined_call_operand.hbm [shape: f32[8,2,32], index: 0, kind: input, shape index: {}]   ;;  %s4296_s1 = inlined_call_operand.hbm [shape: f32[8,2,32], index: 1, kind: input, shape index: {}]   ;;  %s4297_s2 = inlined_call_operand.hbm [shape: bf16[32,32], index: 2, kind: input, shape index: {}]   ;;  %s4298_s3 = inlined_call_operand.hbm [shape: bf16[32,32], index: 3, kind: input, shape index: {}]   ;;  %s4299_s4 = inlined_call_operand.hbm [shape: bf16[32,32], index: 4, kind: input, shape index: {}]   ;;  %s4300_s5 = inlined_call_operand.hbm [shape: f32[1,32], index: 5, kind: input, shape index: {}]   ;;  %s4301_s6 = inlined_call_operand.hbm [shape: f32[1,32], index: 6, kind: input, shape index: {}]   ;;  %s4302_s7 = inlined_call_operand.hbm [shape: f32[1,32], index: 7, kind: input, shape index: {}]   ;;  %s4303_s8 = inlined_call_operand.hbm [shape: bf16[32,32], index: 8, kind: input, shape index: {}]   ;;  %s4304_s9 = inlined_call_operand.hbm [shape: f32[1,32], index: 9, kind: input, shape index: {}]   ;;  %s4305_s10 = inlined_call_operand.hbm [shape: f32[1,32], index: 10, kind: input, shape index: {}]   ;;  %s4306_s11 = inlined_call_operand.hbm [shape: f32[1,32], index: 11, kind: input, shape index: {}]   ;;  %s4307_s12 = inlined_call_operand.hbm [shape: f32[8,2,32], index: 12, kind: output, shape index: {}]  }
   0x1   :  { %18 = vsyncpa [#allocation6], 0 }
   0x2   :  { %19 = vsyncpa [#allocation9], 0 }
   0x3   :  { %20 = vsyncpa [#allocation12], 0 }
   0x4   :  { %21 = vsyncpa [#allocation15], 0 }
   0x5   :  { %22 = vsyncpa [#allocation18], 0 }
   0x6   :  { %23 = vsyncpa [#allocation21], 0 }
   0x7   :  { %24 = vsyncpa [#allocation4], 0  ;;  %s3629_s21 = smov [#allocation5]   ;;  %s3327_s25 = scalar_lea.hbm %s4296_s1, 256 }
   0x8   :  { %s42_s22 = sshll.u32 %s3629_s21, 4  ;;  %p3328_p0 = scmp.ne.s32.totalorder %s4296_s1, %s3327_s25  ;;  %s43_s22 = int_to_ptr.vmem [resolvable:$true] %s42_s22 }
   0x9   :  { %p3331_p1 = scmp.lt.u32.totalorder %s3327_s25, %s4296_s1 }
   0xb   :  { %p3333_p2 = pnand %p3331_p1, %p3328_p0 }
   0xd   :  { %3336 = shalt.err (!%p3333_p2)
}
   0xe   :  { %s3337_s30 = scalar_lea.vmem %s43_s22, 256  ;;  %p3342_p4 = scmp.lt.s32.totalorder %s43_s22, %s43_s22 }
   0xf   :  { %p3338_p3 = scmp.ne.s32.totalorder %s43_s22, %s3337_s30  ;;  %p3343_p5 = scmp.lt.s32.totalorder %s3337_s30, %s3337_s30 }
  0x11   :  { %p3344_p6 = por %p3343_p5, %p3342_p4 }
  0x13   :  { %p3345_p7 = pnand %p3344_p6, %p3338_p3 }
  0x15   :  { %3348 = shalt.err (!%p3345_p7)
}
  0x16   :  { %s3630_s13 = smov 32   ;;  %s3631_s14 = smov 2  }
  0x17   :  { %48 = dma.hbm_to_vmem [thread:$0]  %s4296_s1, 256, %s43_s22, [#allocation6], %s3630_s13, %s3630_s13, %s3631_s14  }
  0x18   :  { %s3632_s17 = smov [#allocation8]   ;;  %s3633_s19 = smov [#allocation11]  }
  0x19   :  { %s66_s18 = sshll.u32 %s3632_s17, 4  ;;  %s91_s20 = sshll.u32 %s3633_s19, 4  ;;  %s67_s18 = int_to_ptr.vmem [resolvable:$true] %s66_s18  ;;  %s92_s20 = int_to_ptr.vmem [resolvable:$true] %s91_s20 }
  0x1a   :  { %s3349_s24 = scalar_lea.hbm %s4298_s3, 256 }
  0x1b   :  { %p3350_p8 = scmp.ne.s32.totalorder %s4298_s3, %s3349_s24  ;;  %p3353_p9 = scmp.lt.u32.totalorder %s3349_s24, %s4298_s3 }
  0x1d   :  { %p3355_p10 = pnand %p3353_p9, %p3350_p8 }
  0x1f   :  { %3358 = shalt.err (!%p3355_p10)
}
  0x20   :  { %s3359_s1 = scalar_lea.vmem %s67_s18, 256  ;;  %p3364_p12 = scmp.lt.s32.totalorder %s67_s18, %s67_s18 }
  0x21   :  { %p3360_p11 = scmp.ne.s32.totalorder %s67_s18, %s3359_s1  ;;  %p3365_p13 = scmp.lt.s32.totalorder %s3359_s1, %s3359_s1 }
  0x23   :  { %p3366_p0 = por %p3365_p13, %p3364_p12 }
  0x25   :  { %p3367_p1 = pnand %p3366_p0, %p3360_p11 }
  0x27   :  { %3370 = shalt.err (!%p3367_p1)
}
  0x28   :  { %s3634_s22 = smov 64   ;;  %s3635_s29 = smov 4  }
  0x29   :  { %72 = dma.hbm_to_vmem [thread:$0]  %s4298_s3, 256, %s67_s18, [#allocation9], %s3634_s22, %s3634_s22, %s3635_s29  }
  0x2a   :  { %s3371_s19 = scalar_lea.hbm %s4300_s5, 16 }
  0x2b   :  { %p3372_p2 = scmp.ne.s32.totalorder %s4300_s5, %s3371_s19  ;;  %p3375_p3 = scmp.lt.u32.totalorder %s3371_s19, %s4300_s5 }
  0x2d   :  { %p3377_p4 = pnand %p3375_p3, %p3372_p2 }
  0x2f   :  { %3380 = shalt.err (!%p3377_p4)
}
  0x30   :  { %s3381_s26 = scalar_lea.vmem %s92_s20, 16  ;;  %s3385_s27 = scalar_lea.vmem %s92_s20, 32 }
  0x31   :  { %p3382_p5 = scmp.ne.s32.totalorder %s92_s20, %s3381_s26  ;;  %p3386_p6 = scmp.lt.s32.totalorder %s92_s20, %s92_s20 }
  0x32   :  { %p3387_p7 = scmp.lt.s32.totalorder %s3385_s27, %s3381_s26 }
  0x34   :  { %p3388_p8 = por %p3387_p7, %p3386_p6 }
  0x36   :  { %p3389_p9 = pnand %p3388_p8, %p3382_p5 }
  0x38   :  { %3392 = shalt.err (!%p3389_p9)
}
  0x39   :  { %94 = dma.hbm_to_vmem [thread:$0]  %s4300_s5, 16, %s92_s20, [#allocation12]  }
  0x3a   :  { %s3636_s28 = smov [#allocation14]   ;;  %s3637_s30 = smov [#allocation17]  }
  0x3b   :  { %s111_s1 = sshll.u32 %s3636_s28, 4  ;;  %s133_s15 = sshll.u32 %s3637_s30, 4  ;;  %s112_s1 = int_to_ptr.vmem [resolvable:$true] %s111_s1  ;;  %s134_s15 = int_to_ptr.vmem [resolvable:$true] %s133_s15 }
  0x3c   :  { %s3393_s19 = scalar_lea.hbm %s4302_s7, 16 }
  0x3d   :  { %p3394_p10 = scmp.ne.s32.totalorder %s4302_s7, %s3393_s19  ;;  %p3397_p11 = scmp.lt.u32.totalorder %s3393_s19, %s4302_s7 }
  0x3f   :  { %p3399_p12 = pnand %p3397_p11, %p3394_p10 }
  0x41   :  { %3402 = shalt.err (!%p3399_p12)
}
  0x42   :  { %s3403_s5 = scalar_lea.vmem %s112_s1, 16  ;;  %s3407_s20 = scalar_lea.vmem %s112_s1, 32 }
  0x43   :  { %p3404_p13 = scmp.ne.s32.totalorder %s112_s1, %s3403_s5  ;;  %p3408_p0 = scmp.lt.s32.totalorder %s112_s1, %s112_s1 }
  0x44   :  { %p3409_p1 = scmp.lt.s32.totalorder %s3407_s20, %s3403_s5 }
  0x46   :  { %p3410_p2 = por %p3409_p1, %p3408_p0 }
  0x48   :  { %p3411_p3 = pnand %p3410_p2, %p3404_p13 }
  0x4a   :  { %3414 = shalt.err (!%p3411_p3)
}
  0x4b   :  { %114 = dma.hbm_to_vmem [thread:$0]  %s4302_s7, 16, %s112_s1, [#allocation15]  }
  0x4c   :  { %s3415_s28 = scalar_lea.hbm %s4304_s9, 16 }
  0x4d   :  { %p3416_p4 = scmp.ne.s32.totalorder %s4304_s9, %s3415_s28  ;;  %p3419_p5 = scmp.lt.u32.totalorder %s3415_s28, %s4304_s9 }
  0x4f   :  { %p3421_p6 = pnand %p3419_p5, %p3416_p4 }
  0x51   :  { %3424 = shalt.err (!%p3421_p6)
}
  0x52   :  { %s3425_s21 = scalar_lea.vmem %s134_s15, 16  ;;  %s3429_s23 = scalar_lea.vmem %s134_s15, 32 }
  0x53   :  { %p3426_p7 = scmp.ne.s32.totalorder %s134_s15, %s3425_s21  ;;  %p3430_p8 = scmp.lt.s32.totalorder %s134_s15, %s134_s15 }
  0x54   :  { %p3431_p9 = scmp.lt.s32.totalorder %s3429_s23, %s3425_s21 }
  0x56   :  { %p3432_p10 = por %p3431_p9, %p3430_p8 }
  0x58   :  { %p3433_p11 = pnand %p3432_p10, %p3426_p7 }
  0x5a   :  { %3436 = shalt.err (!%p3433_p11)
}
  0x5b   :  { %136 = dma.hbm_to_vmem [thread:$0]  %s4304_s9, 16, %s134_s15, [#allocation18]  }
  0x5c   :  { %s3638_s24 = smov [#allocation2]   ;;  %s3639_s5 = smov [#allocation7]  }
  0x5d   :  { %s30_s25 = sshll.u32 %s3638_s24, 4  ;;  %s54_s20 = sshll.u32 %s3639_s5, 4  ;;  %s31_s25 = int_to_ptr.vmem [resolvable:$true] %s30_s25  ;;  %s55_s20 = int_to_ptr.vmem [resolvable:$true] %s54_s20 }
  0x5e   :  { %s3437_s3 = scalar_lea.hbm %s4295_s0, 256 }
  0x5f   :  { %p3438_p12 = scmp.ne.s32.totalorder %s4295_s0, %s3437_s3  ;;  %p3441_p13 = scmp.lt.u32.totalorder %s3437_s3, %s4295_s0 }
  0x61   :  { %p3443_p0 = pnand %p3441_p13, %p3438_p12 }
  0x63   :  { %3446 = shalt.err (!%p3443_p0)
}
  0x64   :  { %s3447_s9 = scalar_lea.vmem %s31_s25, 256  ;;  %p3452_p2 = scmp.lt.s32.totalorder %s31_s25, %s31_s25 }
  0x65   :  { %p3448_p1 = scmp.ne.s32.totalorder %s31_s25, %s3447_s9  ;;  %p3453_p3 = scmp.lt.s32.totalorder %s3447_s9, %s3447_s9 }
  0x67   :  { %p3454_p4 = por %p3453_p3, %p3452_p2 }
  0x69   :  { %p3455_p5 = pnand %p3454_p4, %p3448_p1 }
  0x6b   :  { %3458 = shalt.err (!%p3455_p5)
}
  0x6c   :  { %36 = dma.hbm_to_vmem [thread:$0]  %s4295_s0, 256, %s31_s25, [#allocation3], %s3630_s13, %s3630_s13, %s3631_s14  }
  0x6d   :  { %s3459_s23 = scalar_lea.hbm %s4297_s2, 256 }
  0x6e   :  { %p3460_p6 = scmp.ne.s32.totalorder %s4297_s2, %s3459_s23  ;;  %p3463_p7 = scmp.lt.u32.totalorder %s3459_s23, %s4297_s2 }
  0x70   :  { %p3465_p8 = pnand %p3463_p7, %p3460_p6 }
  0x72   :  { %3468 = shalt.err (!%p3465_p8)
}
  0x73   :  { %s3469_s26 = scalar_lea.vmem %s55_s20, 256  ;;  %p3474_p10 = scmp.lt.s32.totalorder %s55_s20, %s55_s20 }
  0x74   :  { %p3470_p9 = scmp.ne.s32.totalorder %s55_s20, %s3469_s26  ;;  %p3475_p11 = scmp.lt.s32.totalorder %s3469_s26, %s3469_s26 }
  0x76   :  { %p3476_p12 = por %p3475_p11, %p3474_p10 }
  0x78   :  { %p3477_p13 = pnand %p3476_p12, %p3470_p9 }
  0x7a   :  { %3480 = shalt.err (!%p3477_p13)
}
  0x7b   :  { %60 = dma.hbm_to_vmem [thread:$0]  %s4297_s2, 256, %s55_s20, [#allocation6], %s3634_s22, %s3634_s22, %s3635_s29  }
  0x7c   :  { %s3640_s27 = smov [#allocation10]   ;;  %s3641_s18 = smov [#allocation13]  }
  0x7d   :  { %s78_s3 = sshll.u32 %s3640_s27, 4  ;;  %s101_s28 = sshll.u32 %s3641_s18, 4  ;;  %s79_s3 = int_to_ptr.vmem [resolvable:$true] %s78_s3  ;;  %s102_s28 = int_to_ptr.vmem [resolvable:$true] %s101_s28 }
  0x7e   :  { %s3481_s9 = scalar_lea.hbm %s4299_s4, 256 }
  0x7f   :  { %p3482_p0 = scmp.ne.s32.totalorder %s4299_s4, %s3481_s9  ;;  %p3485_p1 = scmp.lt.u32.totalorder %s3481_s9, %s4299_s4 }
  0x81   :  { %p3487_p2 = pnand %p3485_p1, %p3482_p0 }
  0x83   :  { %3490 = shalt.err (!%p3487_p2)
}
  0x84   :  { %s3491_s2 = scalar_lea.vmem %s79_s3, 256  ;;  %p3496_p4 = scmp.lt.s32.totalorder %s79_s3, %s79_s3 }
  0x85   :  { %p3492_p3 = scmp.ne.s32.totalorder %s79_s3, %s3491_s2  ;;  %p3497_p5 = scmp.lt.s32.totalorder %s3491_s2, %s3491_s2 }
  0x87   :  { %p3498_p6 = por %p3497_p5, %p3496_p4 }
  0x89   :  { %p3499_p7 = pnand %p3498_p6, %p3492_p3 }
  0x8b   :  { %3502 = shalt.err (!%p3499_p7)
}
  0x8c   :  { %84 = dma.hbm_to_vmem [thread:$0]  %s4299_s4, 256, %s79_s3, [#allocation9], %s3634_s22, %s3634_s22, %s3635_s29  }
  0x8d   :  { %s3503_s24 = scalar_lea.hbm %s4301_s6, 16 }
  0x8e   :  { %p3504_p8 = scmp.ne.s32.totalorder %s4301_s6, %s3503_s24  ;;  %p3507_p9 = scmp.lt.u32.totalorder %s3503_s24, %s4301_s6 }
  0x90   :  { %p3509_p10 = pnand %p3507_p9, %p3504_p8 }
  0x92   :  { %3512 = shalt.err (!%p3509_p10)
}
  0x93   :  { %s3513_s27 = scalar_lea.vmem %s102_s28, 16  ;;  %s3517_s18 = scalar_lea.vmem %s102_s28, 32 }
  0x94   :  { %p3514_p11 = scmp.ne.s32.totalorder %s102_s28, %s3513_s27  ;;  %p3518_p12 = scmp.lt.s32.totalorder %s102_s28, %s102_s28 }
  0x95   :  { %p3519_p13 = scmp.lt.s32.totalorder %s3517_s18, %s3513_s27 }
  0x97   :  { %p3520_p0 = por %p3519_p13, %p3518_p12 }
  0x99   :  { %p3521_p1 = pnand %p3520_p0, %p3514_p11 }
  0x9b   :  { %3524 = shalt.err (!%p3521_p1)
}
  0x9c   :  { %104 = dma.hbm_to_vmem [thread:$0]  %s4301_s6, 16, %s102_s28, [#allocation12]  }
  0x9d   :  { %s3642_s30 = smov [#allocation16]   ;;  %s3643_s9 = smov [#allocation19]  }
  0x9e   :  { %s120_s16 = sshll.u32 %s3642_s30, 4  ;;  %s143_s15 = sshll.u32 %s3643_s9, 4  ;;  %s121_s16 = int_to_ptr.vmem [resolvable:$true] %s120_s16  ;;  %s144_s15 = int_to_ptr.vmem [resolvable:$true] %s143_s15 }
  0x9f   :  { %s3525_s21 = scalar_lea.hbm %s4303_s8, 256 }
  0xa0   :  { %p3526_p2 = scmp.ne.s32.totalorder %s4303_s8, %s3525_s21  ;;  %p3529_p3 = scmp.lt.u32.totalorder %s3525_s21, %s4303_s8 }
  0xa2   :  { %p3531_p4 = pnand %p3529_p3, %p3526_p2 }
  0xa4   :  { %3534 = shalt.err (!%p3531_p4)
}
  0xa5   :  { %s3535_s6 = scalar_lea.vmem %s121_s16, 256  ;;  %p3540_p6 = scmp.lt.s32.totalorder %s121_s16, %s121_s16 }
  0xa6   :  { %p3536_p5 = scmp.ne.s32.totalorder %s121_s16, %s3535_s6  ;;  %p3541_p7 = scmp.lt.s32.totalorder %s3535_s6, %s3535_s6 }
  0xa8   :  { %p3542_p8 = por %p3541_p7, %p3540_p6 }
  0xaa   :  { %p3543_p9 = pnand %p3542_p8, %p3536_p5 }
  0xac   :  { %3546 = shalt.err (!%p3543_p9)
}
  0xad   :  { %126 = dma.hbm_to_vmem [thread:$0]  %s4303_s8, 256, %s121_s16, [#allocation15], %s3634_s22, %s3634_s22, %s3635_s29  }
  0xae   :  { %s3547_s26 = scalar_lea.hbm %s4305_s10, 16 }
  0xaf   :  { %p3548_p10 = scmp.ne.s32.totalorder %s4305_s10, %s3547_s26  ;;  %p3551_p11 = scmp.lt.u32.totalorder %s3547_s26, %s4305_s10 }
  0xb1   :  { %p3553_p12 = pnand %p3551_p11, %p3548_p10 }
  0xb3   :  { %3556 = shalt.err (!%p3553_p12)
}
  0xb4   :  { %s3557_s4 = scalar_lea.vmem %s144_s15, 16  ;;  %s3561_s3 = scalar_lea.vmem %s144_s15, 32 }
  0xb5   :  { %p3558_p13 = scmp.ne.s32.totalorder %s144_s15, %s3557_s4  ;;  %p3562_p0 = scmp.lt.s32.totalorder %s144_s15, %s144_s15 }
  0xb6   :  { %p3563_p1 = scmp.lt.s32.totalorder %s3561_s3, %s3557_s4 }
  0xb8   :  { %p3564_p2 = por %p3563_p1, %p3562_p0 }
  0xba   :  { %p3565_p3 = pnand %p3564_p2, %p3558_p13 }
  0xbc   :  { %3568 = shalt.err (!%p3565_p3)
}
  0xbd   :  { %146 = dma.hbm_to_vmem [thread:$0]  %s4305_s10, 16, %s144_s15, [#allocation18]  }
  0xbe   :  { %s3644_s29 = smov [#allocation20]   ;;  %s3569_s17 = scalar_lea.hbm %s4306_s11, 16 }
  0xbf   :  { %s153_s30 = sshll.u32 %s3644_s29, 4  ;;  %p3570_p4 = scmp.ne.s32.totalorder %s4306_s11, %s3569_s17  ;;  %s154_s30 = int_to_ptr.vmem [resolvable:$true] %s153_s30 }
  0xc0   :  { %p3573_p5 = scmp.lt.u32.totalorder %s3569_s17, %s4306_s11 }
  0xc2   :  { %p3575_p6 = pnand %p3573_p5, %p3570_p4 }
  0xc4   :  { %3578 = shalt.err (!%p3575_p6)
}
  0xc5   :  { %s3579_s23 = scalar_lea.vmem %s154_s30, 16  ;;  %s3583_s10 = scalar_lea.vmem %s154_s30, 32 }
  0xc6   :  { %p3580_p7 = scmp.ne.s32.totalorder %s154_s30, %s3579_s23  ;;  %p3584_p8 = scmp.lt.s32.totalorder %s154_s30, %s154_s30 }
  0xc7   :  { %p3585_p9 = scmp.lt.s32.totalorder %s3583_s10, %s3579_s23 }
  0xc9   :  { %p3586_p10 = por %p3585_p9, %p3584_p8 }
  0xcb   :  { %p3587_p11 = pnand %p3586_p10, %p3580_p7 }
  0xcd   :  { %3590 = shalt.err (!%p3587_p11)
}
  0xce   :  { %156 = dma.hbm_to_vmem [thread:$0]  %s4306_s11, 16, %s154_s30, [#allocation21]  }
  0xcf   :  { %3613 = dma.done.wait [#allocation3], 256  }
  0xd0   :  { %3614 = vsyncadd [#allocation3], 4294967040 }
  0xd1   :  { %3615 = dma.done.wait [#allocation6], 512  }
  0xd2   :  { %3616 = vsyncadd [#allocation6], 4294966784 }
  0xd3   :  { %3617 = dma.done.wait [#allocation9], 512  }
  0xd4   :  { %3618 = vsyncadd [#allocation9], 4294966784 }
  0xd5   :  { %3619 = dma.done.wait [#allocation12], 32  }
  0xd6   :  { %3620 = vsyncadd [#allocation12], 4294967264 }
  0xd7   :  { %3621 = dma.done.wait [#allocation15], 272  }
  0xd8   :  { %3622 = vsyncadd [#allocation15], 4294967024 }
  0xd9   :  { %3623 = dma.done.wait [#allocation18], 32  }
  0xda   :  { %3624 = vsyncadd [#allocation18], 4294967264 }
  0xdb   :  { %3625 = dma.done.wait [#allocation21], 16  }
  0xdc   :  { %3626 = vsyncadd [#allocation21], 4294967280  ;;  %v3645_v0 = vmov 0.0   ;;  %vm3646_vm0 = vmmov 0   ;;  %vm331_vm1 = vcmask 261120   ;;  %v3275_v1 = vld [vmem:[#allocation8] sm:$0xff]   ;;  %v233_v4 = vlaneseq }
  0xdd   :  { %3108 = vmatprep.subr.bf16.mxu1 %v3645_v0  ;;  %3100 = vmatprep.subr.bf16.mxu0 %v3645_v0  ;;  %v3647_v2 = vmov 1983009808   ;;  %v3276_v5 = vld [vmem:[#allocation7] sm:$0xff]   ;;  %v404_v6 = vsel %vm331_vm1, %v3275_v1, 0  ;;  %v3277_v7 = vld [vmem:[#allocation8 + $0x8] sm:$0xff]   ;;  %v3278_v9 = vld [vmem:[#allocation7 + $0x8] sm:$0xff]  }
  0xde   :  { %3112 = vmatprep.mubr.msk.bf16.mxu1 %vm3646_vm0, %v3645_v0  ;;  %3104 = vmatprep.mubr.msk.bf16.mxu0 %vm3646_vm0, %v3645_v0  ;;  %v231_v3 = vunpack.c.l.s4 %v3647_v2  ;;  %v336_v8 = vsel %vm331_vm1, %v3276_v5, 0  ;;  %v194_v10 = vld [vmem:[#allocation2] sm:$0x3]  ;;  %v195_v11 = vld [vmem:[#allocation2 + $0x2] sm:$0x3]  ;;  %v3897_v13 = vshrl.u32 %v233_v4, 7 }
  0xdf   :  { %3109 = vmatpush3.bf16.xpose.msra.mxu1 %v404_v6  ;;  %3101 = vmatpush3.bf16.xpose.msra.mxu0 %v336_v8  ;;  %v407_v14 = vsel %vm331_vm1, %v3277_v7, 0  ;;  %v339_v15 = vsel %vm331_vm1, %v3278_v9, 0  ;;  %v196_v16 = vld [vmem:[#allocation2 + $0x4] sm:$0x3]  ;;  %v197_v17 = vld [vmem:[#allocation2 + $0x6] sm:$0x3]  ;;  %v273_v54 = vcombine.low %v194_v10, %v195_v11 }
  0xe0   :  { %3110 = vmatprep.subr.bf16.mxu1 %v3645_v0  ;;  %v232_v12 = vunpack.c.0.s8 %v231_v3  ;;  %3102 = vmatprep.subr.bf16.mxu0 %v3645_v0  ;;  %v198_v18 = vld [vmem:[#allocation2 + $0x8] sm:$0x3]  ;;  %v199_v19 = vld [vmem:[#allocation2 + $0xa] sm:$0x3]  ;;  %v200_v20 = vld [vmem:[#allocation2 + $0xc] sm:$0x3]  ;;  %v274_v55 = vcombine.low %v196_v16, %v197_v17 }
  0xe1   :  { %v201_v21 = vld [vmem:[#allocation2 + $0xe] sm:$0x3]  ;;  %v204_v22 = vld [vmem:[#allocation5] sm:$0x3]  ;;  %v205_v23 = vld [vmem:[#allocation5 + $0x2] sm:$0x3]  ;;  %v290_v56 = vcombine.low %v198_v18, %v199_v19 }
  0xe2   :  { %v206_v24 = vld [vmem:[#allocation5 + $0x4] sm:$0x3]  ;;  %v207_v25 = vld [vmem:[#allocation5 + $0x6] sm:$0x3]  ;;  %v208_v26 = vld [vmem:[#allocation5 + $0x8] sm:$0x3]  ;;  %v212_v27 = vadd.f32 %v204_v22, %v194_v10  ;;  %v213_v28 = vadd.f32 %v205_v23, %v195_v11  ;;  %v3903_v29 = vsub.s32 %v232_v12, %v3897_v13  ;;  %v291_v57 = vcombine.low %v200_v20, %v201_v21 }
  0xe3   :  { %v209_v30 = vld [vmem:[#allocation5 + $0xa] sm:$0x3]  ;;  %v210_v31 = vld [vmem:[#allocation5 + $0xc] sm:$0x3]  ;;  %v211_v32 = vld [vmem:[#allocation5 + $0xe] sm:$0x3]  ;;  %v214_v33 = vadd.f32 %v206_v24, %v196_v16  ;;  %v215_v34 = vadd.f32 %v207_v25, %v197_v17  ;;  %v216_v35 = vadd.f32 %v208_v26, %v198_v18 }
  0xe4   :  { %v217_v36 = vadd.f32 %v209_v30, %v199_v19  ;;  %v218_v37 = vadd.f32 %v210_v31, %v200_v20  ;;  %v219_v38 = vadd.f32 %v211_v32, %v201_v21  ;;  %v228_v39 = vcombine.low %v212_v27, %v213_v28  ;;  %v3279_v47 = vld [vmem:[#allocation10] sm:$0xff]   ;;  %v3280_v52 = vld [vmem:[#allocation10 + $0x8] sm:$0xff]   ;;  %v3010_v2 = vld [vmem:[#allocation11] ss:$0 sm:$0xff]  ;;  %s3648_s11 = smov 104   ;;  %s3649_s6 = smov 120  }
  0xe5   :  { %v229_v40 = vcombine.low %v214_v33, %v215_v34  ;;  %v475_v51 = vsel %vm331_vm1, %v3279_v47, 0  ;;  %v478_v53 = vsel %vm331_vm1, %v3280_v52, 0  ;;  %v281_v58 = vrot.slane %v273_v54, %v3903_v29  ;;  %v3014_v3 = vld [vmem:[#allocation13] ss:$0 sm:$0xff]  ;;  %s3650_s28 = smov 112   ;;  %s3653_s1 = smov 16  }
  0xe6   :  { %v236_v41 = vrot.slane %v228_v39, %v3903_v29  ;;  %v245_v42 = vcombine.low %v216_v35, %v217_v36  ;;  %v246_v43 = vcombine.low %v218_v37, %v219_v38  ;;  %v288_v59 = vrot.slane %v274_v55, %v3903_v29  ;;  %v3018_v19 = vld [vmem:[#allocation14] ss:$0 sm:$0xff]  ;;  %s3654_s24 = smov 8   ;;  %s3655_s5 = smov 24  }
  0xe7   :  { %3111 = vmatpush3.bf16.xpose.msra.mxu1 %v407_v14  ;;  %3103 = vmatpush3.bf16.xpose.msra.mxu0 %v339_v15  ;;  %v243_v44 = vrot.slane %v229_v40, %v3903_v29  ;;  %v298_v60 = vrot.slane %v290_v56, %v3903_v29  ;;  %v305_v61 = vrot.slane %v291_v57, %v3903_v29  ;;  %v3651_v27 = vmov 1934713408   ;;  %s3660_s26 = smov [#allocation22]  }
  0xe8   :  { %3124 = vmatprep.subr.bf16.mxu1 %v3645_v0  ;;  %3116 = vmatprep.subr.bf16.mxu0 %v3645_v0  ;;  %v253_v45 = vrot.slane %v245_v42, %v3903_v29  ;;  %v260_v46 = vrot.slane %v246_v43, %v3903_v29  ;;  %v289_v62 = vcombine.low %v281_v58, %v288_v59  ;;  %v584_v28 = vunpack.c.l.s4 %v3651_v27  ;;  %s2992_s0 = sshll.u32 %s3660_s26, 4  ;;  %s2993_s0 = int_to_ptr.vmem [resolvable:$true] %s2992_s0 }
  0xe9   :  { %v244_v48 = vcombine.low %v236_v41, %v243_v44  ;;  %v306_v63 = vcombine.low %v298_v60, %v305_v61  ;;  %v3652_v30 = vmov 0   ;;  %vm1367_vm2 = vcmask 64512   ;;  %s3591_s25 = scalar_lea.vmem %s2993_s0, 256  ;;  %p3596_p13 = scmp.lt.s32.totalorder %s2993_s0, %s2993_s0 }
  0xea   :  { %v261_v49 = vcombine.low %v253_v45, %v260_v46  ;;  %v3937_v31 = vpack.i.b16 %v3652_v30, %v3652_v30  ;;  %v585_v34 = vunpack.c.0.s8 %v584_v28  ;;  %vm1835_vm3 = vcmask 1043456   ;;  %p3592_p12 = scmp.ne.s32.totalorder %s2993_s0, %s3591_s25  ;;  %p3597_p0 = scmp.lt.s32.totalorder %s3591_s25, %s3591_s25 }
  0xeb   :  { %v309_v1 = vpack.c.bf16 %v306_v63, %v289_v62  ;;  %vm2515_vm4 = vcmask 130048   ;;  %vm2518_vm5 = vcmask 195584   ;;  %vm2978_vm6 = vcmask 254976  }
  0xec   :  { %v264_v50 = vpack.c.bf16 %v261_v49, %v244_v48  ;;  %v3941_v40 = vsub.s32 %v585_v34, %v3897_v13  ;;  %p3598_p1 = por %p3597_p0, %p3596_p13 }
  0xee   :  { %3113 = vmatmul.mubr.msk.bf16.vlgmr.msra.gmra.mrb[0].mxu1 %vm331_vm1, %v264_v50  ;;  %3105 = vmatmul.mubr.msk.bf16.vlgmr.msra.gmra.mrb[0].mxu0 %vm331_vm1, %v264_v50  ;;  %p3599_p2 = pnand %p3598_p1, %p3592_p12 }
  0xef   :  { %3117 = vmatpush3.bf16.xpose.msra.mxu0 %v475_v51  ;;  %3120 = vmatprep.mubr.msk.bf16.mxu0 %vm3646_vm0, %v3645_v0 }
  0xf0   :  { %3118 = vmatprep.subr.bf16.mxu0 %v3645_v0  ;;  %3126 = vmatprep.mubr.msk.bf16.mxu1 %vm3646_vm0, %v3645_v0 }
  0xf7   :  { %3119 = vmatpush3.bf16.xpose.msra.mxu0 %v478_v53 }
  0xf8   :  { %3148 = vmatprep.subr.bf16.mxu0 %v3645_v0 }
  0xfe   :  { %3121 = vmatmul.mubr.msk.bf16.vlgmr.msra.gmra.mrb[4].mxu0 %vm331_vm1, %v309_v1 }
  0xff   :  { %3150 = vmatprep.mubr.msk.bf16.mxu0 %vm3646_vm0, %v3645_v0 }
 0x1c1   :  { %v443_v4 = vpop.f32.mrb[0].mxu1  ;;  %v375_v5 = vpop.f32.mrb[0].mxu0 }
 0x1c2   :  { %v3114_v6 = vpop.f32.mrb[1].mxu1  ;;  %v376_v7 = vadd.f32 %v3010_v2, %v375_v5  ;;  %v3106_v8 = vpop.f32.mrb[1].mxu0  ;;  %v444_v11 = vadd.f32 %v3014_v3, %v443_v4 }
 0x1c3   :  { %v446_v9 = vpop.f32.mrb[2].mxu1  ;;  %v378_v10 = vpop.f32.mrb[2].mxu0 }
 0x1c4   :  { %v447_v12 = vadd.f32 %v3014_v3, %v446_v9  ;;  %v3115_v14 = vpop.f32.mrb[3].mxu1  ;;  %v379_v15 = vadd.f32 %v3010_v2, %v378_v10  ;;  %v3107_v16 = vpop.f32.mrb[3].mxu0 }
 0x1c6   :  { %v807_v17 = vpack.c.bf16 %v447_v12, %v444_v11  ;;  %v521_v18 = vpack.c.bf16 %v379_v15, %v376_v7 }
 0x1c8   :  { %813 = vrot.lane.b32.xlu1 %v807_v17, %s3648_s11  ;;  %809 = vrot.lane.b32.xlu0 %v807_v17, %s3649_s6  ;;  %v819_v36 = vshrl.u32 %v807_v17, 16  ;;  %v533_v43 = vshrl.u32 %v521_v18, 16 }
 0x1cc   :  { %811 = vrot.lane.b32.xlu0 %v807_v17, %s3650_s28  ;;  %523 = vrot.lane.b32.xlu1 %v521_v18, %s3649_s6 }
 0x1d0   :  { %525 = vrot.lane.b32.xlu0 %v521_v18, %s3650_s28  ;;  %527 = vrot.lane.b32.xlu1 %v521_v18, %s3648_s11 }
 0x1d1   :  { %v514_v20 = vpop.f32.mrb[4].mxu0 }
 0x1d2   :  { %v515_v21 = vadd.f32 %v3018_v19, %v514_v20  ;;  %v3122_v22 = vpop.f32.mrb[5].mxu0 }
 0x1d3   :  { %v517_v23 = vpop.f32.mrb[6].mxu0 }
 0x1d4   :  { %v518_v24 = vadd.f32 %v3018_v19, %v517_v23  ;;  %v3123_v25 = vpop.f32.mrb[7].mxu0 }
 0x1d6   :  { %v3932_v26 = vpack.c.bf16 %v518_v24, %v515_v21 }
 0x1d8   :  { %1089 = vrot.lane.b32.xlu0 %v3932_v26, %s3649_s6 }
 0x23a   :  { %v814_v32 = vpop.permute.xlu1 %813  ;;  %v810_v33 = vpop.permute.xlu0 %809 }
 0x23b   :  { %v817_v35 = vpack.i.b16 %v810_v33, %v807_v17  ;;  %v820_v37 = vshrl.u32 %v810_v33, 16  ;;  %v828_v44 = vshrl.u32 %v814_v32, 16 }
 0x23d   :  { %v821_v38 = vpack.i.b16 %v820_v37, %v819_v36  ;;  %v831_v39 = vcombine.high %v817_v35, %v3937_v31  ;;  %v838_v45 = vrot.slane %v817_v35, %v3903_v29 }
 0x23e   :  { %v812_v41 = vpop.permute.xlu0 %811  ;;  %v524_v42 = vpop.permute.xlu1 %523 }
 0x23f   :  { %v897_v46 = vcombine.high %v821_v38, %v3937_v31  ;;  %v825_v47 = vpack.i.b16 %v814_v32, %v812_v41  ;;  %v845_v48 = vrot.slane %v831_v39, %v3903_v29  ;;  %v827_v49 = vshrl.u32 %v812_v41, 16 }
 0x240   :  { %v531_v50 = vpack.i.b16 %v524_v42, %v521_v18  ;;  %v534_v51 = vshrl.u32 %v524_v42, 16  ;;  %v904_v52 = vrot.slane %v821_v38, %v3903_v29 }
 0x241   :  { %v911_v53 = vrot.slane %v897_v46, %v3903_v29  ;;  %v846_v54 = vcombine.high %v825_v47, %v3937_v31  ;;  %v853_v55 = vrot.slane %v825_v47, %v3903_v29  ;;  %v829_v56 = vpack.i.b16 %v828_v44, %v827_v49 }
 0x242   :  { %v535_v57 = vpack.i.b16 %v534_v51, %v533_v43  ;;  %v551_v58 = vcombine.high %v531_v50, %v3937_v31  ;;  %v558_v59 = vrot.slane %v531_v50, %v3903_v29  ;;  %v526_v60 = vpop.permute.xlu0 %525  ;;  %v528_v6 = vpop.permute.xlu1 %527 }
 0x243   :  { %v860_v61 = vrot.slane %v846_v54, %v3903_v29  ;;  %v861_v62 = vcombine.low %v838_v45, %v853_v55  ;;  %v862_v63 = vcombine.high %v838_v45, %v853_v55  ;;  %v541_v1 = vshrl.u32 %v526_v60, 16 }
 0x244   :  { %v912_v2 = vcombine.high %v829_v56, %v3937_v31  ;;  %v919_v3 = vrot.slane %v829_v56, %v3903_v29  ;;  %v565_v4 = vrot.slane %v551_v58, %v3903_v29  ;;  %v617_v5 = vcombine.high %v535_v57, %v3937_v31 }
 0x245   :  { %v869_v7 = vrot.slane %v861_v62, %v3941_v40  ;;  %v876_v8 = vrot.slane %v862_v63, %v3941_v40  ;;  %v877_v9 = vcombine.low %v845_v48, %v860_v61  ;;  %v878_v10 = vcombine.high %v845_v48, %v860_v61 }
 0x246   :  { %v926_v11 = vrot.slane %v912_v2, %v3903_v29  ;;  %v927_v12 = vcombine.low %v904_v52, %v919_v3  ;;  %v928_v14 = vcombine.high %v904_v52, %v919_v3  ;;  %v624_v15 = vrot.slane %v535_v57, %v3903_v29 }
 0x247   :  { %v885_v16 = vrot.slane %v877_v9, %v3941_v40  ;;  %v892_v17 = vrot.slane %v878_v10, %v3941_v40  ;;  %v631_v18 = vrot.slane %v617_v5, %v3903_v29  ;;  %v539_v19 = vpack.i.b16 %v528_v6, %v526_v60 }
 0x248   :  { %v935_v20 = vrot.slane %v927_v12, %v3941_v40  ;;  %v942_v21 = vrot.slane %v928_v14, %v3941_v40  ;;  %v943_v22 = vcombine.low %v911_v53, %v926_v11  ;;  %v944_v23 = vcombine.high %v911_v53, %v926_v11 }
 0x249   :  { %v963_v24 = vcombine.low %v869_v7, %v885_v16  ;;  %v971_v25 = vcombine.low %v876_v8, %v892_v17  ;;  %v3026_v27 = vcombine.high %v869_v7, %v885_v16  ;;  %v3027_v28 = vcombine.high %v876_v8, %v892_v17 }
 0x24a   :  { %v951_v32 = vrot.slane %v943_v22, %v3941_v40  ;;  %v958_v33 = vrot.slane %v944_v23, %v3941_v40  ;;  %v542_v34 = vshrl.u32 %v528_v6, 16  ;;  %v566_v35 = vcombine.high %v539_v19, %v3937_v31 }
 0x24b   :  { %v970_v36 = vrot.slane %v963_v24, %v3903_v29  ;;  %v978_v37 = vrot.slane %v971_v25, %v3903_v29  ;;  %v995_v38 = vrot.slane %v3026_v27, %v3903_v29  ;;  %v1003_v39 = vrot.slane %v3027_v28, %v3903_v29 }
 0x24c   :  { %v1013_v41 = vcombine.low %v935_v20, %v951_v32  ;;  %v1021_v42 = vcombine.low %v942_v21, %v958_v33  ;;  %v3028_v43 = vcombine.high %v935_v20, %v951_v32  ;;  %v3029_v44 = vcombine.high %v942_v21, %v958_v33 }
 0x24d   :  { %v543_v45 = vpack.i.b16 %v542_v34, %v541_v1  ;;  %v573_v46 = vrot.slane %v539_v19, %v3903_v29  ;;  %v580_v47 = vrot.slane %v566_v35, %v3903_v29  ;;  %v979_v48 = vcombine.low %v970_v36, %v978_v37 }
 0x24e   :  { %v1020_v49 = vrot.slane %v1013_v41, %v3903_v29  ;;  %v1028_v50 = vrot.slane %v1021_v42, %v3903_v29  ;;  %v1045_v51 = vrot.slane %v3028_v43, %v3903_v29  ;;  %v1053_v52 = vrot.slane %v3029_v44, %v3903_v29 }
 0x24f   :  { %v581_v53 = vcombine.low %v558_v59, %v573_v46  ;;  %v582_v54 = vcombine.high %v558_v59, %v573_v46  ;;  %v597_v55 = vcombine.low %v565_v4, %v580_v47  ;;  %v598_v56 = vcombine.high %v565_v4, %v580_v47 }
 0x250   :  { %v632_v57 = vcombine.high %v543_v45, %v3937_v31  ;;  %v639_v58 = vrot.slane %v543_v45, %v3903_v29  ;;  %v986_v60 = vrot.slane %v979_v48, %v3941_v40  ;;  %v1004_v61 = vcombine.low %v995_v38, %v1003_v39 }
 0x251   :  { %v589_v62 = vrot.slane %v581_v53, %v3941_v40  ;;  %v596_v63 = vrot.slane %v582_v54, %v3941_v40  ;;  %v605_v1 = vrot.slane %v597_v55, %v3941_v40  ;;  %v612_v2 = vrot.slane %v598_v56, %v3941_v40 }
 0x252   :  { %v646_v3 = vrot.slane %v632_v57, %v3903_v29  ;;  %v647_v59 = vcombine.low %v624_v15, %v639_v58  ;;  %v648_v5 = vcombine.high %v624_v15, %v639_v58  ;;  %v1011_v4 = vrot.slane %v1004_v61, %v3941_v40 }
 0x253   :  { %v683_v6 = vcombine.low %v589_v62, %v605_v1  ;;  %v691_v7 = vcombine.low %v596_v63, %v612_v2  ;;  %v3022_v8 = vcombine.high %v589_v62, %v605_v1  ;;  %v3023_v9 = vcombine.high %v596_v63, %v612_v2 }
 0x254   :  { %v655_v10 = vrot.slane %v647_v59, %v3941_v40  ;;  %v662_v11 = vrot.slane %v648_v5, %v3941_v40  ;;  %v663_v12 = vcombine.low %v631_v18, %v646_v3  ;;  %v664_v14 = vcombine.high %v631_v18, %v646_v3 }
 0x255   :  { %v690_v16 = vrot.slane %v683_v6, %v3903_v29  ;;  %v698_v17 = vrot.slane %v691_v7, %v3903_v29  ;;  %v715_v19 = vrot.slane %v3022_v8, %v3903_v29  ;;  %v723_v15 = vrot.slane %v3023_v9, %v3903_v29 }
 0x256   :  { %v671_v20 = vrot.slane %v663_v12, %v3941_v40  ;;  %v678_v21 = vrot.slane %v664_v14, %v3941_v40  ;;  %v1065_v22 = vpack.i.b16 %v1011_v4, %v986_v60  ;;  %v1029_v23 = vcombine.low %v1020_v49, %v1028_v50 }
 0x257   :  { %v699_v24 = vcombine.low %v690_v16, %v698_v17  ;;  %v724_v25 = vcombine.low %v715_v19, %v723_v15  ;;  %v1054_v27 = vcombine.low %v1045_v51, %v1053_v52  ;;  %v1066_v36 = vshrl.u32 %v986_v60, 16 }
 0x258   :  { %v733_v28 = vcombine.low %v655_v10, %v671_v20  ;;  %v741_v32 = vcombine.low %v662_v11, %v678_v21  ;;  %v3024_v18 = vcombine.high %v655_v10, %v671_v20  ;;  %v3025_v33 = vcombine.high %v662_v11, %v678_v21 }
 0x259   :  { %v1372_v34 = vsel %vm1367_vm2, %v1065_v22, 0  ;;  %v3998_v35 = vrot.slane %v1029_v23, %v3941_v40  ;;  %v706_v42 = vrot.slane %v699_v24, %v3941_v40  ;;  %v731_v43 = vrot.slane %v724_v25, %v3941_v40 }
 0x25a   :  { %v740_v37 = vrot.slane %v733_v28, %v3903_v29  ;;  %v748_v38 = vrot.slane %v741_v32, %v3903_v29  ;;  %v765_v39 = vrot.slane %v3024_v18, %v3903_v29  ;;  %v773_v41 = vrot.slane %v3025_v33, %v3903_v29  ;;  %3125 = vmatpush3.bf16.xpose.msra.mxu1 %v1372_v34 }
 0x25b   :  { %v1061_v44 = vrot.slane %v1054_v27, %v3941_v40  ;;  %3130 = vmatprep.subr.bf16.mxu1 %v3645_v0  ;;  %v1067_v45 = vshrl.u32 %v1011_v4, 16  ;;  %v785_v51 = vpack.i.b16 %v731_v43, %v706_v42  ;;  %v1037_v52 = vcombine.high %v3998_v35, %v3652_v30 }
 0x25c   :  { %v749_v46 = vcombine.low %v740_v37, %v748_v38  ;;  %v774_v47 = vcombine.low %v765_v39, %v773_v41  ;;  %v987_v54 = vcombine.high %v986_v60, %v3652_v30  ;;  %v1012_v58 = vcombine.high %v1011_v4, %v3652_v30 }
 0x25d   :  { %v1077_v48 = vpack.i.b16 %v1061_v44, %v3998_v35  ;;  %v1068_v49 = vpack.i.b16 %v1067_v45, %v1066_v36  ;;  %v1062_v53 = vcombine.high %v1061_v44, %v3652_v30  ;;  %v786_v62 = vshrl.u32 %v706_v42, 16 }
 0x25e   :  { %v756_v56 = vrot.slane %v749_v46, %v3941_v40  ;;  %v781_v57 = vrot.slane %v774_v47, %v3941_v40  ;;  %v787_v63 = vshrl.u32 %v731_v43, 16  ;;  %v1071_v1 = vpack.i.b16 %v1012_v58, %v987_v54 }
 0x25f   :  { %v1556_v50 = vsel %vm1367_vm2, %v1077_v48, 0  ;;  %v1418_v55 = vsel %vm1367_vm2, %v1068_v49, 0  ;;  %v1083_v61 = vpack.i.b16 %v1062_v53, %v1037_v52  ;;  %v1072_v6 = vshrl.u32 %v987_v54, 16 }
 0x260   :  { %3149 = vmatpush3.bf16.xpose.msra.mxu0 %v1556_v50  ;;  %v797_v60 = vpack.i.b16 %v781_v57, %v756_v56  ;;  %v788_v3 = vpack.i.b16 %v787_v63, %v786_v62  ;;  %v757_v59 = vcombine.high %v756_v56, %v3652_v30  ;;  %v1464_v5 = vsel %vm1367_vm2, %v1071_v1, 0 }
 0x261   :  { %3127 = vmatmul.mubr.msk.bf16.vlgmr.msra.gmra.mrb[4].mxu1 %vm1367_vm2, %v785_v51  ;;  %3160 = vmatprep.subr.bf16.mxu0 %v3645_v0  ;;  %v1648_v2 = vsel %vm1367_vm2, %v1083_v61, 0  ;;  %v782_v4 = vcombine.high %v781_v57, %v3652_v30  ;;  %v1073_v7 = vshrl.u32 %v1012_v58, 16  ;;  %v707_v8 = vcombine.high %v706_v42, %v3652_v30 }
 0x262   :  { %3131 = vmatpush3.bf16.xpose.msra.mxu1 %v1418_v55  ;;  %3132 = vmatprep.mubr.msk.bf16.mxu1 %vm3646_vm0, %v3645_v0  ;;  %v732_v9 = vcombine.high %v731_v43, %v3652_v30  ;;  %v1078_v16 = vshrl.u32 %v3998_v35, 16  ;;  %v1079_v17 = vshrl.u32 %v1061_v44, 16  ;;  %v1084_v23 = vshrl.u32 %v1037_v52, 16 }
 0x263   :  { %3136 = vmatprep.subr.bf16.mxu1 %v3645_v0  ;;  %v803_v10 = vpack.i.b16 %v782_v4, %v757_v59  ;;  %v1074_v11 = vpack.i.b16 %v1073_v7, %v1072_v6  ;;  %v792_v19 = vshrl.u32 %v707_v8, 16  ;;  %v1085_v24 = vshrl.u32 %v1062_v53, 16 }
 0x264   :  { %v791_v12 = vpack.i.b16 %v732_v9, %v707_v8  ;;  %v793_v15 = vshrl.u32 %v732_v9, 16  ;;  %v1080_v20 = vpack.i.b16 %v1079_v17, %v1078_v16  ;;  %v798_v25 = vshrl.u32 %v756_v56, 16  ;;  %v1090_v16 = vpop.permute.xlu0 %1089 }
 0x265   :  { %v1510_v14 = vsel %vm1367_vm2, %v1074_v11, 0  ;;  %v799_v27 = vshrl.u32 %v781_v57, 16  ;;  %v1086_v28 = vpack.i.b16 %v1085_v24, %v1084_v23  ;;  %v804_v33 = vshrl.u32 %v757_v59, 16 }
 0x266   :  { %v794_v21 = vpack.i.b16 %v793_v15, %v792_v19  ;;  %v1602_v22 = vsel %vm1367_vm2, %v1080_v20, 0  ;;  %v805_v34 = vshrl.u32 %v782_v4, 16 }
 0x267   :  { %3151 = vmatmul.mubr.msk.bf16.vlgmr.msra.gmra.mrb[8].mxu0 %vm1367_vm2, %v797_v60  ;;  %v800_v32 = vpack.i.b16 %v799_v27, %v798_v25  ;;  %v1694_v18 = vsel %vm1367_vm2, %v1086_v28, 0 }
 0x268   :  { %3161 = vmatpush3.bf16.xpose.msra.mxu0 %v1648_v2  ;;  %3162 = vmatprep.mubr.msk.bf16.mxu0 %vm3646_vm0, %v3645_v0  ;;  %v806_v35 = vpack.i.b16 %v805_v34, %v804_v33 }
 0x269   :  { %3133 = vmatmul.mubr.msk.bf16.vlgmr.msra.gmra.mrb[8].mxu1 %vm1367_vm2, %v788_v3  ;;  %3172 = vmatprep.subr.bf16.mxu0 %v3645_v0 }
 0x26a   :  { %3137 = vmatpush3.bf16.xpose.msra.mxu1 %v1464_v5  ;;  %3138 = vmatprep.mubr.msk.bf16.mxu1 %vm3646_vm0, %v3645_v0 }
 0x26b   :  { %3142 = vmatprep.subr.bf16.mxu1 %v3645_v0 }
 0x26f   :  { %3163 = vmatmul.mubr.msk.bf16.vlgmr.msra.gmra.mrb[12].mxu0 %vm1367_vm2, %v803_v10 }
 0x270   :  { %3174 = vmatprep.mubr.msk.bf16.mxu0 %vm3646_vm0, %v3645_v0 }
 0x271   :  { %3139 = vmatmul.mubr.msk.bf16.vlgmr.msra.gmra.mrb[12].mxu1 %vm1367_vm2, %v791_v12 }
 0x272   :  { %3143 = vmatpush3.bf16.xpose.msra.mxu1 %v1510_v14  ;;  %3144 = vmatprep.mubr.msk.bf16.mxu1 %vm3646_vm0, %v3645_v0 }
 0x273   :  { %3154 = vmatprep.subr.bf16.mxu1 %v3645_v0 }
 0x279   :  { %3145 = vmatmul.mubr.msk.bf16.vlgmr.msra.gmra.mrb[16].mxu1 %vm1367_vm2, %v794_v21 }
 0x27a   :  { %3155 = vmatpush3.bf16.xpose.msra.mxu1 %v1602_v22  ;;  %3156 = vmatprep.mubr.msk.bf16.mxu1 %vm3646_vm0, %v3645_v0  ;;  %v1097_v22 = vpack.i.b16 %v1090_v16, %v3932_v26 }
 0x27b   :  { %3166 = vmatprep.subr.bf16.mxu1 %v3645_v0 }
 0x27c   :  { %v1111_v28 = vcombine.high %v1097_v22, %v3937_v31  ;;  %v1118_v33 = vrot.slane %v1097_v22, %v3903_v29 }
 0x281   :  { %3157 = vmatmul.mubr.msk.bf16.vlgmr.msra.gmra.mrb[20].mxu1 %vm1367_vm2, %v800_v32 }
 0x282   :  { %3167 = vmatpush3.bf16.xpose.msra.mxu1 %v1694_v18  ;;  %3168 = vmatprep.mubr.msk.bf16.mxu1 %vm3646_vm0, %v3645_v0 }
 0x283   :  { %3178 = vmatprep.subr.bf16.mxu1 %v3645_v0 }
 0x289   :  { %3169 = vmatmul.mubr.msk.bf16.vlgmr.msra.gmra.mrb[24].mxu1 %vm1367_vm2, %v806_v35 }
 0x28a   :  { %3180 = vmatprep.mubr.msk.bf16.mxu1 %vm3646_vm0, %v3645_v0 }
 0x334   :  { %v1408_v36 = vpop.f32.mrb[4].mxu1 }
 0x335   :  { %v3128_v37 = vpop.f32.mrb[5].mxu1  ;;  %v1736_v38 = vsel %vm1367_vm2, %v1408_v36, -inf }
 0x336   :  { %v1411_v39 = vpop.f32.mrb[6].mxu1  ;;  %1737 = vmax.xlane.f32.xlu0 %v1736_v38 }
 0x337   :  { %v3129_v41 = vpop.f32.mrb[7].mxu1 }
 0x33a   :  { %v4060_v42 = vpop.f32.mrb[8].mxu0 }
 0x33b   :  { %v3152_v43 = vpop.f32.mrb[9].mxu0  ;;  %v1748_v9 = vsel %vm1367_vm2, %v4060_v42, -inf }
 0x33c   :  { %v1595_v44 = vpop.f32.mrb[10].mxu0  ;;  %v1454_v45 = vpop.f32.mrb[8].mxu1 }
 0x33d   :  { %v3153_v46 = vpop.f32.mrb[11].mxu0  ;;  %v3134_v47 = vpop.f32.mrb[9].mxu1  ;;  %v1739_v48 = vsel %vm1367_vm2, %v1454_v45, -inf }
 0x33e   :  { %1740 = vmax.xlane.f32.xlu1 %v1739_v48  ;;  %v1457_v49 = vpop.f32.mrb[10].mxu1 }
 0x33f   :  { %v3135_v50 = vpop.f32.mrb[11].mxu1 }
 0x342   :  { %v4063_v51 = vpop.f32.mrb[12].mxu0 }
 0x343   :  { %v3164_v52 = vpop.f32.mrb[13].mxu0  ;;  %v1754_v11 = vsel %vm1367_vm2, %v4063_v51, -inf }
 0x344   :  { %v1687_v53 = vpop.f32.mrb[14].mxu0  ;;  %v4065_v54 = vpop.f32.mrb[12].mxu1 }
 0x345   :  { %v3165_v55 = vpop.f32.mrb[15].mxu0  ;;  %v3140_v56 = vpop.f32.mrb[13].mxu1  ;;  %v1742_v10 = vsel %vm1367_vm2, %v4065_v54, -inf }
 0x346   :  { %v1503_v57 = vpop.f32.mrb[14].mxu1 }
 0x347   :  { %v3141_v58 = vpop.f32.mrb[15].mxu1  ;;  %v1099_v57 = vshrl.u32 %v3932_v26, 16 }
 0x348   :  { %v1100_v58 = vshrl.u32 %v1090_v16, 16 }
 0x34c   :  { %v4067_v61 = vpop.f32.mrb[16].mxu1  ;;  %1093 = vrot.lane.b32.xlu0 %v3932_v26, %s3648_s11 }
 0x34d   :  { %v3146_v62 = vpop.f32.mrb[17].mxu1  ;;  %v1745_v8 = vsel %vm1367_vm2, %v4067_v61, -inf }
 0x34e   :  { %v1549_v63 = vpop.f32.mrb[18].mxu1 }
 0x34f   :  { %v3147_v60 = vpop.f32.mrb[19].mxu1  ;;  %1091 = vrot.lane.b32.xlu1 %v3932_v26, %s3650_s28 }
 0x354   :  { %v4073_v1 = vpop.f32.mrb[20].mxu1 }
 0x355   :  { %v3158_v2 = vpop.f32.mrb[21].mxu1  ;;  %v1751_v12 = vsel %vm1367_vm2, %v4073_v1, -inf }
 0x356   :  { %v1641_v3 = vpop.f32.mrb[22].mxu1 }
 0x357   :  { %v3159_v59 = vpop.f32.mrb[23].mxu1 }
 0x35c   :  { %v4075_v5 = vpop.f32.mrb[24].mxu1 }
 0x35d   :  { %v3170_v4 = vpop.f32.mrb[25].mxu1  ;;  %v1757_v14 = vsel %vm1367_vm2, %v4075_v5, -inf }
 0x35e   :  { %v1733_v6 = vpop.f32.mrb[26].mxu1 }
 0x35f   :  { %v3171_v7 = vpop.f32.mrb[27].mxu1 }
 0x36b   :  { %1746 = vmax.xlane.f32.xlu0 %v1745_v8 }
 0x36f   :  { %1749 = vmax.xlane.f32.xlu0 %v1748_v9 }
 0x373   :  { %1743 = vmax.xlane.f32.xlu1 %v1742_v10  ;;  %1755 = vmax.xlane.f32.xlu0 %v1754_v11  ;;  %v1101_v10 = vpack.i.b16 %v1100_v58, %v1099_v57 }
 0x377   :  { %1752 = vmax.xlane.f32.xlu1 %v1751_v12 }
 0x37b   :  { %1758 = vmax.xlane.f32.xlu1 %v1757_v14 }
 0x3c3   :  { %v1738_v17 = vpop.xlane.xlu0 %1737 }
 0x3c4   :  { %v1760_v19 = vsub.f32 %v1408_v36, %v1738_v17  ;;  %v1125_v36 = vrot.slane %v1111_v28, %v3903_v29 }
 0x3c6   :  { %v1768_v15 = vpack.c.bf16 %v1760_v19, %v1760_v19 }
 0x3c7   :  { %v1094_v25 = vpop.permute.xlu0 %1093 }
 0x3c8   :  { %v1777_v20 = vmul.bf16 1069105081, %v1768_v15  ;;  %v1108_v62 = vshrl.u32 %v1094_v25, 16 }
 0x3ca   :  { %3283 = vpow.bf16 %v1777_v20 }
 0x3cb   :  { %v1741_v21 = vpop.xlane.xlu1 %1740 }
 0x3cc   :  { %v1761_v23 = vsub.f32 %v1454_v45, %v1741_v21  ;;  %v1177_v21 = vcombine.high %v1101_v10, %v3937_v31 }
 0x3ce   :  { %v1769_v24 = vpack.c.bf16 %v1761_v23, %v1761_v23 }
 0x3cf   :  { %v1092_v27 = vpop.permute.xlu1 %1091 }
 0x3d0   :  { %v1780_v32 = vmul.bf16 1069105081, %v1769_v24  ;;  %v1105_v18 = vpack.i.b16 %v1094_v25, %v1092_v27  ;;  %v1107_v50 = vshrl.u32 %v1092_v27, 16 }
 0x3d2   :  { %3285 = vpow.bf16 %v1780_v32  ;;  %v1126_v34 = vcombine.high %v1105_v18, %v3937_v31  ;;  %v1133_v35 = vrot.slane %v1105_v18, %v3903_v29  ;;  %v1109_v6 = vpack.i.b16 %v1108_v62, %v1107_v50 }
 0x3d4   :  { %v1140_v37 = vrot.slane %v1126_v34, %v3903_v29  ;;  %v1141_v38 = vcombine.low %v1118_v33, %v1133_v35  ;;  %v1142_v39 = vcombine.high %v1118_v33, %v1133_v35  ;;  %v1192_v14 = vcombine.high %v1109_v6, %v3937_v31 }
 0x3d5   :  { %v3284_v41 = vpop.eup %3283  ;;  %v1191_v33 = vrot.slane %v1177_v21, %v3903_v29  ;;  %v1199_v34 = vrot.slane %v1109_v6, %v3903_v29  ;;  %v1184_v35 = vrot.slane %v1101_v10, %v3903_v29 }
 0x3d6   :  { %v1157_v43 = vcombine.low %v1125_v36, %v1140_v37  ;;  %v1158_v44 = vcombine.high %v1125_v36, %v1140_v37  ;;  %v1800_v45 = vunpack.c.l.bf16 %v3284_v41  ;;  %v1149_v46 = vrot.slane %v1141_v38, %v3941_v40 }
 0x3d7   :  { %v1156_v47 = vrot.slane %v1142_v39, %v3941_v40  ;;  %v1206_v28 = vrot.slane %v1192_v14, %v3903_v29  ;;  %v1207_v39 = vcombine.low %v1184_v35, %v1199_v34 }
 0x3d8   :  { %v1165_v48 = vrot.slane %v1157_v43, %v3941_v40  ;;  %v1172_v49 = vrot.slane %v1158_v44, %v3941_v40  ;;  %v1808_v63 = vsel %vm1367_vm2, %v1800_v45, 0.0 }
 0x3d9   :  { %1809 = vadd.xlane.f32.xlu0 %v1808_v63  ;;  %v1223_v36 = vcombine.low %v1191_v33, %v1206_v28  ;;  %v1224_v37 = vcombine.high %v1191_v33, %v1206_v28  ;;  %v1215_v45 = vrot.slane %v1207_v39, %v3941_v40 }
 0x3da   :  { %v1243_v52 = vcombine.low %v1149_v46, %v1165_v48  ;;  %v1251_v53 = vcombine.low %v1156_v47, %v1172_v49  ;;  %v3030_v55 = vcombine.high %v1149_v46, %v1165_v48  ;;  %v3031_v56 = vcombine.high %v1156_v47, %v1172_v49 }
 0x3db   :  { %v1231_v43 = vrot.slane %v1223_v36, %v3941_v40  ;;  %v1238_v44 = vrot.slane %v1224_v37, %v3941_v40 }
 0x3dc   :  { %v1250_v60 = vrot.slane %v1243_v52, %v3903_v29  ;;  %v1258_v2 = vrot.slane %v1251_v53, %v3903_v29  ;;  %v1275_v3 = vrot.slane %v3030_v55, %v3903_v29  ;;  %v1283_v59 = vrot.slane %v3031_v56, %v3903_v29 }
 0x3dd   :  { %v3286_v4 = vpop.eup %3285  ;;  %v1293_v47 = vcombine.low %v1215_v45, %v1231_v43  ;;  %v3032_v49 = vcombine.high %v1215_v45, %v1231_v43 }
 0x3de   :  { %v1801_v7 = vunpack.c.l.bf16 %v3286_v4  ;;  %v1259_v8 = vcombine.low %v1250_v60, %v1258_v2  ;;  %v1284_v9 = vcombine.low %v1275_v3, %v1283_v59 }
 0x3df   :  { %v1300_v52 = vrot.slane %v1293_v47, %v3903_v29  ;;  %v1325_v55 = vrot.slane %v3032_v49, %v3903_v29 }
 0x3e0   :  { %v1811_v26 = vsel %vm1367_vm2, %v1801_v7, 0.0  ;;  %v1266_v11 = vrot.slane %v1259_v8, %v3941_v40  ;;  %v1291_v12 = vrot.slane %v1284_v9, %v3941_v40 }
 0x3e1   :  { %1812 = vadd.xlane.f32.xlu1 %v1811_v26 }
 0x3e2   :  { %v1345_v16 = vpack.i.b16 %v1291_v12, %v1266_v11  ;;  %v1346_v17 = vshrl.u32 %v1266_v11, 16  ;;  %v1347_v19 = vshrl.u32 %v1291_v12, 16  ;;  %v1267_v15 = vcombine.high %v1266_v11, %v3652_v30 }
 0x3e3   :  { %v1292_v20 = vcombine.high %v1291_v12, %v3652_v30 }
 0x3e4   :  { %v1837_v22 = vsel %vm1835_vm3, %v1345_v16, 0  ;;  %v1348_v23 = vpack.i.b16 %v1347_v19, %v1346_v17  ;;  %v1352_v24 = vshrl.u32 %v1267_v15, 16 }
 0x3e5   :  { %3173 = vmatpush3.bf16.msra.mxu0 %v1837_v22  ;;  %v1351_v25 = vpack.i.b16 %v1292_v20, %v1267_v15  ;;  %v1353_v27 = vshrl.u32 %v1292_v20, 16 }
 0x3e6   :  { %v1883_v32 = vsel %vm1835_vm3, %v1348_v23, 0  ;;  %3184 = vmatprep.subr.bf16.mxu0 %v3645_v0 }
 0x3e7   :  { %3179 = vmatpush3.bf16.msra.mxu1 %v1883_v32  ;;  %v1354_v18 = vpack.i.b16 %v1353_v27, %v1352_v24  ;;  %v1929_v31 = vsel %vm1835_vm3, %v1351_v25, 0 }
 0x3e8   :  { %3175 = vmatmul.mubr.msk.bf16.vlgmr.msra.gmra.mrb[16].mxu0 %vm1367_vm2, %v3284_v41  ;;  %3190 = vmatprep.subr.bf16.mxu1 %v3645_v0  ;;  %v1208_v41 = vcombine.high %v1184_v35, %v1199_v34 }
 0x3e9   :  { %3185 = vmatpush3.bf16.msra.mxu0 %v1929_v31  ;;  %3186 = vmatprep.mubr.msk.bf16.mxu0 %vm3646_vm0, %v3645_v0  ;;  %v1975_v38 = vsel %vm1835_vm3, %v1354_v18, 0 }
 0x3ea   :  { %3181 = vmatmul.mubr.msk.bf16.vlgmr.msra.gmra.mrb[28].mxu1 %vm1367_vm2, %v3286_v4  ;;  %3196 = vmatprep.subr.bf16.mxu0 %v3645_v0  ;;  %v1222_v46 = vrot.slane %v1208_v41, %v3941_v40 }
 0x3eb   :  { %3191 = vmatpush3.bf16.msra.mxu1 %v1975_v38  ;;  %3192 = vmatprep.mubr.msk.bf16.mxu1 %vm3646_vm0, %v3645_v0 }
 0x3ec   :  { %3202 = vmatprep.subr.bf16.mxu1 %v3645_v0  ;;  %v1301_v48 = vcombine.low %v1222_v46, %v1238_v44  ;;  %v3033_v50 = vcombine.high %v1222_v46, %v1238_v44 }
 0x3ee   :  { %v1308_v53 = vrot.slane %v1301_v48, %v3903_v29  ;;  %v1333_v56 = vrot.slane %v3033_v50, %v3903_v29 }
 0x3f0   :  { %v1309_v62 = vcombine.low %v1300_v52, %v1308_v53  ;;  %v1334_v60 = vcombine.low %v1325_v55, %v1333_v56 }
 0x3f2   :  { %v1316_v4 = vrot.slane %v1309_v62, %v3941_v40  ;;  %v1341_v7 = vrot.slane %v1334_v60, %v3941_v40 }
 0x3f4   :  { %v1358_v11 = vshrl.u32 %v1316_v4, 16  ;;  %v1359_v16 = vshrl.u32 %v1341_v7, 16  ;;  %v1342_v25 = vcombine.high %v1341_v7, %v3652_v30  ;;  %v1357_v33 = vpack.i.b16 %v1341_v7, %v1316_v4 }
 0x3f6   :  { %v1360_v21 = vpack.i.b16 %v1359_v16, %v1358_v11  ;;  %v1365_v31 = vshrl.u32 %v1342_v25, 16  ;;  %v2021_v38 = vsel %vm1835_vm3, %v1357_v33, 0 }
 0x3f8   :  { %v1747_v57 = vpop.xlane.xlu0 %1746  ;;  %v2067_v28 = vsel %vm1835_vm3, %v1360_v21, 0 }
 0x3f9   :  { %v1763_v58 = vsub.f32 %v4067_v61, %v1747_v57  ;;  %v3281_v57 = vld [vmem:[#allocation16] sm:$0xff]  }
 0x3fb   :  { %v1771_v63 = vpack.c.bf16 %v1763_v58, %v1763_v58  ;;  %v2547_v58 = vsel %vm331_vm1, %v3281_v57, 0 }
 0x3fc   :  { %v1750_v2 = vpop.xlane.xlu0 %1749 }
 0x3fd   :  { %v1786_v3 = vmul.bf16 1069105081, %v1771_v63  ;;  %v1764_v59 = vsub.f32 %v4060_v42, %v1750_v2 }
 0x3ff   :  { %3287 = vpow.bf16 %v1786_v3  ;;  %v1772_v6 = vpack.c.bf16 %v1764_v59, %v1764_v59 }
 0x400   :  { %v1744_v8 = vpop.xlane.xlu1 %1743  ;;  %v1756_v9 = vpop.xlane.xlu0 %1755 }
 0x401   :  { %v1789_v10 = vmul.bf16 1069105081, %v1772_v6  ;;  %v1762_v26 = vsub.f32 %v4065_v54, %v1744_v8  ;;  %v1766_v61 = vsub.f32 %v4063_v51, %v1756_v9  ;;  %v1317_v51 = vcombine.high %v1316_v4, %v3652_v30 }
 0x403   :  { %3289 = vpow.bf16 %v1789_v10  ;;  %v1770_v12 = vpack.c.bf16 %v1762_v26, %v1762_v26  ;;  %v1774_v14 = vpack.c.bf16 %v1766_v61, %v1766_v61  ;;  %v1364_v34 = vshrl.u32 %v1317_v51, 16 }
 0x404   :  { %v1753_v17 = vpop.xlane.xlu1 %1752  ;;  %v1363_v48 = vpack.i.b16 %v1342_v25, %v1317_v51 }
 0x405   :  { %v1783_v42 = vmul.bf16 1069105081, %v1770_v12  ;;  %v1795_v19 = vmul.bf16 1069105081, %v1774_v14  ;;  %v1765_v15 = vsub.f32 %v4073_v1, %v1753_v17  ;;  %v1366_v41 = vpack.i.b16 %v1365_v31, %v1364_v34 }
 0x406   :  { %v2113_v53 = vsel %vm1835_vm3, %v1363_v48, 0 }
 0x407   :  { %3291 = vpow.bf16 %v1783_v42  ;;  %v1773_v20 = vpack.c.bf16 %v1765_v15, %v1765_v15  ;;  %v2159_v46 = vsel %vm1835_vm3, %v1366_v41, 0 }
 0x408   :  { %3293 = vpow.bf16 %v1795_v19  ;;  %v1759_v22 = vpop.xlane.xlu1 %1758 }
 0x409   :  { %v1792_v23 = vmul.bf16 1069105081, %v1773_v20  ;;  %v1767_v54 = vsub.f32 %v4075_v5, %v1759_v22 }
 0x40a   :  { %v3288_v24 = vpop.eup %3287 }
 0x40b   :  { %3295 = vpow.bf16 %v1792_v23  ;;  %v1775_v27 = vpack.c.bf16 %v1767_v54, %v1767_v54  ;;  %3193 = vmatmul.mubr.msk.bf16.vlgmr.msra.gmra.mrb[32].mxu1 %vm1367_vm2, %v3288_v24  ;;  %v1803_v1 = vunpack.c.l.bf16 %v3288_v24 }
 0x40c   :  { %3203 = vmatpush3.bf16.msra.mxu1 %v2067_v28  ;;  %3204 = vmatprep.mubr.msk.bf16.mxu1 %vm3646_vm0, %v3645_v0 }
 0x40d   :  { %v1798_v32 = vmul.bf16 1069105081, %v1775_v27  ;;  %v1817_v18 = vsel %vm1367_vm2, %v1803_v1, 0.0  ;;  %3214 = vmatprep.subr.bf16.mxu1 %v3645_v0 }
 0x40e   :  { %v3290_v5 = vpop.eup %3289  ;;  %1818 = vadd.xlane.f32.xlu1 %v1817_v18 }
 0x40f   :  { %3297 = vpow.bf16 %v1798_v32  ;;  %v1804_v30 = vunpack.c.l.bf16 %v3290_v5 }
 0x411   :  { %v1820_v35 = vsel %vm1367_vm2, %v1804_v30, 0.0 }
 0x412   :  { %v3292_v36 = vpop.eup %3291  ;;  %1821 = vadd.xlane.f32.xlu0 %v1820_v35 }
 0x413   :  { %v3294_v37 = vpop.eup %3293  ;;  %3187 = vmatmul.mubr.msk.bf16.vlgmr.msra.gmra.mrb[20].mxu0 %vm1367_vm2, %v3292_v36  ;;  %v1802_v39 = vunpack.c.l.bf16 %v3292_v36 }
 0x414   :  { %3197 = vmatpush3.bf16.msra.mxu0 %v2021_v38  ;;  %3198 = vmatprep.mubr.msk.bf16.mxu0 %vm3646_vm0, %v3645_v0  ;;  %v1806_v44 = vunpack.c.l.bf16 %v3294_v37 }
 0x415   :  { %v1814_v43 = vsel %vm1367_vm2, %v1802_v39, 0.0  ;;  %3208 = vmatprep.subr.bf16.mxu0 %v3645_v0 }
 0x416   :  { %v3296_v45 = vpop.eup %3295  ;;  %1815 = vadd.xlane.f32.xlu0 %v1814_v43  ;;  %v1826_v50 = vsel %vm1367_vm2, %v1806_v44, 0.0 }
 0x417   :  { %3205 = vmatmul.mubr.msk.bf16.vlgmr.msra.gmra.mrb[36].mxu1 %vm1367_vm2, %v3296_v45  ;;  %v1805_v47 = vunpack.c.l.bf16 %v3296_v45 }
 0x418   :  { %3215 = vmatpush3.bf16.msra.mxu1 %v2159_v46  ;;  %3216 = vmatprep.mubr.msk.bf16.mxu1 %vm3646_vm0, %v3645_v0 }
 0x419   :  { %v1823_v49 = vsel %vm1367_vm2, %v1805_v47, 0.0 }
 0x41a   :  { %v3298_v52 = vpop.eup %3297  ;;  %1824 = vadd.xlane.f32.xlu1 %v1823_v49  ;;  %1827 = vadd.xlane.f32.xlu0 %v1826_v50 }
 0x41b   :  { %3199 = vmatmul.mubr.msk.bf16.vlgmr.msra.gmra.mrb[24].mxu0 %vm1367_vm2, %v3290_v5  ;;  %v1807_v55 = vunpack.c.l.bf16 %v3298_v52 }
 0x41c   :  { %3209 = vmatpush3.bf16.msra.mxu0 %v2113_v53  ;;  %3210 = vmatprep.mubr.msk.bf16.mxu0 %vm3646_vm0, %v3645_v0 }
 0x41d   :  { %v1829_v56 = vsel %vm1367_vm2, %v1807_v55, 0.0  ;;  %3220 = vmatprep.subr.bf16.mxu0 %v3645_v0 }
 0x41e   :  { %1830 = vadd.xlane.f32.xlu1 %v1829_v56 }
 0x41f   :  { %3217 = vmatmul.mubr.msk.bf16.vlgmr.msra.gmra.mrb[40].mxu1 %vm1367_vm2, %v3298_v52 }
 0x423   :  { %3211 = vmatmul.mubr.msk.bf16.vlgmr.msra.gmra.mrb[28].mxu0 %vm1367_vm2, %v3294_v37 }
 0x424   :  { %3224 = vmatprep.mubr.msk.bf16.mxu0 %vm3646_vm0, %v3645_v0 }
 0x425   :  { %3221 = vmatpush3.bf16.xpose.msra.mxu0 %v2547_v58 }
 0x426   :  { %3222 = vmatprep.subr.bf16.mxu0 %v3645_v0 }
 0x466   :  { %v1810_v8 = vpop.xlane.xlu0 %1809 }
 0x46e   :  { %v1813_v7 = vpop.xlane.xlu1 %1812 }
 0x46f   :  { %3299 = vrcp.f32 %v1813_v7 }
 0x479   :  { %v3300_v61 = vpop.eup %3299 }
 0x49b   :  { %v1819_v9 = vpop.xlane.xlu1 %1818 }
 0x49c   :  { %3301 = vrcp.f32 %v1819_v9 }
 0x49d   :  { %3303 = vrcp.f32 %v1810_v8 }
 0x49f   :  { %v1822_v10 = vpop.xlane.xlu0 %1821 }
 0x4a3   :  { %v1816_v26 = vpop.xlane.xlu0 %1815 }
 0x4a4   :  { %3305 = vrcp.f32 %v1816_v26 }
 0x4a6   :  { %v3302_v11 = vpop.eup %3301 }
 0x4a7   :  { %v1825_v42 = vpop.xlane.xlu1 %1824  ;;  %v3304_v22 = vpop.eup %3303 }
 0x4a8   :  { %3307 = vrcp.f32 %v1825_v42  ;;  %v1828_v1 = vpop.xlane.xlu0 %1827 }
 0x4ab   :  { %v1831_v54 = vpop.xlane.xlu1 %1830 }
 0x4ac   :  { %3309 = vrcp.f32 %v1831_v54 }
 0x4ad   :  { %3311 = vrcp.f32 %v1822_v10 }
 0x4ae   :  { %v3306_v23 = vpop.eup %3305  ;;  %3313 = vrcp.f32 %v1828_v1 }
 0x4b2   :  { %v3308_v49 = vpop.eup %3307 }
 0x4b6   :  { %v3310_v52 = vpop.eup %3309 }
 0x4b7   :  { %v3312_v55 = vpop.eup %3311 }
 0x4bb   :  { %v1873_v62 = vpop.f32.mrb[16].mxu0 }
 0x4bc   :  { %v3176_v63 = vpop.f32.mrb[17].mxu0  ;;  %v2209_v51 = vmul.f32 %v3304_v22, %v1873_v62 }
 0x4bd   :  { %v1876_v60 = vpop.f32.mrb[18].mxu0  ;;  %v1919_v2 = vpop.f32.mrb[28].mxu1 }
 0x4be   :  { %v3177_v3 = vpop.f32.mrb[19].mxu0  ;;  %v3182_v59 = vpop.f32.mrb[29].mxu1  ;;  %v2210_v14 = vmul.f32 %v3300_v61, %v1919_v2 }
 0x4bf   :  { %v1922_v4 = vpop.f32.mrb[30].mxu1  ;;  %v3314_v63 = vpop.eup %3313 }
 0x4c0   :  { %v3183_v6 = vpop.f32.mrb[31].mxu1 }
 0x4de   :  { %v2011_v12 = vpop.f32.mrb[32].mxu1 }
 0x4df   :  { %v2212_v16 = vmul.f32 %v3302_v11, %v2011_v12  ;;  %v3194_v17 = vpop.f32.mrb[33].mxu1 }
 0x4e0   :  { %v2014_v19 = vpop.f32.mrb[34].mxu1 }
 0x4e1   :  { %v2233_v15 = vcombine.low %v2210_v14, %v2212_v16  ;;  %v2234_v20 = vcombine.high %v2210_v14, %v2212_v16  ;;  %v3195_v21 = vpop.f32.mrb[35].mxu1 }
 0x4e3   :  { %v2241_v30 = vrot.slane %v2233_v15, %v3903_v29  ;;  %v2248_v34 = vrot.slane %v2234_v20, %v3903_v29 }
 0x4e6   :  { %v1965_v24 = vpop.f32.mrb[20].mxu0 }
 0x4e7   :  { %v2211_v25 = vmul.f32 %v3306_v23, %v1965_v24  ;;  %v3188_v27 = vpop.f32.mrb[21].mxu0 }
 0x4e8   :  { %v1968_v28 = vpop.f32.mrb[22].mxu0 }
 0x4e9   :  { %v2217_v32 = vcombine.low %v2209_v51, %v2211_v25  ;;  %v2218_v18 = vcombine.high %v2209_v51, %v2211_v25  ;;  %v3189_v5 = vpop.f32.mrb[23].mxu0 }
 0x4ea   :  { %v2103_v33 = vpop.f32.mrb[36].mxu1 }
 0x4eb   :  { %v2225_v31 = vrot.slane %v2217_v32, %v3903_v29  ;;  %v2232_v35 = vrot.slane %v2218_v18, %v3903_v29  ;;  %v3206_v36 = vpop.f32.mrb[37].mxu1  ;;  %v2214_v56 = vmul.f32 %v3308_v49, %v2103_v33 }
 0x4ec   :  { %v2106_v37 = vpop.f32.mrb[38].mxu1 }
 0x4ed   :  { %v2249_v38 = vcombine.low %v2225_v31, %v2241_v30  ;;  %v2250_v39 = vcombine.high %v2225_v31, %v2241_v30  ;;  %v2265_v41 = vcombine.low %v2232_v35, %v2248_v34  ;;  %v2266_v43 = vcombine.high %v2232_v35, %v2248_v34  ;;  %v3207_v44 = vpop.f32.mrb[39].mxu1 }
 0x4ee   :  { %v2057_v45 = vpop.f32.mrb[24].mxu0 }
 0x4ef   :  { %v3200_v46 = vpop.f32.mrb[25].mxu0  ;;  %v2213_v59 = vmul.f32 %v3312_v55, %v2057_v45  ;;  %v2257_v7 = vrot.slane %v2249_v38, %v3941_v40  ;;  %v2264_v8 = vrot.slane %v2250_v39, %v3941_v40  ;;  %v2273_v9 = vrot.slane %v2265_v41, %v3941_v40 }
 0x4f0   :  { %v2060_v47 = vpop.f32.mrb[26].mxu0  ;;  %v2280_v10 = vrot.slane %v2266_v43, %v3941_v40 }
 0x4f1   :  { %v3201_v48 = vpop.f32.mrb[27].mxu0  ;;  %v2281_v19 = vcombine.high %v2257_v7, %v3645_v0  ;;  %v2282_v15 = vcombine.high %v2264_v8, %v3645_v0  ;;  %v2283_v20 = vcombine.high %v2273_v9, %v3645_v0 }
 0x4f2   :  { %v2195_v50 = vpop.f32.mrb[40].mxu1  ;;  %v2284_v21 = vcombine.high %v2280_v10, %v3645_v0 }
 0x4f3   :  { %v3218_v53 = vpop.f32.mrb[41].mxu1  ;;  %v2216_v57 = vmul.f32 %v3310_v52, %v2195_v50  ;;  %v2353_v1 = vcombine.low %v2257_v7, %v2281_v19  ;;  %v2369_v32 = vcombine.low %v2264_v8, %v2282_v15  ;;  %v2421_v18 = vcombine.low %v2273_v9, %v2283_v20 }
 0x4f4   :  { %v2198_v58 = vpop.f32.mrb[42].mxu1  ;;  %v2437_v5 = vcombine.low %v2280_v10, %v2284_v21 }
 0x4f5   :  { %v3219_v62 = vpop.f32.mrb[43].mxu1  ;;  %v2301_v60 = vcombine.low %v2214_v56, %v2216_v57  ;;  %v2302_v2 = vcombine.high %v2214_v56, %v2216_v57  ;;  %v2360_v39 = vrot.slane %v2353_v1, %v3903_v29  ;;  %v2376_v41 = vrot.slane %v2369_v32, %v3903_v29 }
 0x4f6   :  { %v2149_v3 = vpop.f32.mrb[28].mxu0  ;;  %v2428_v43 = vrot.slane %v2421_v18, %v3903_v29  ;;  %v2444_v44 = vrot.slane %v2437_v5, %v3903_v29  ;;  %v3050_v5 = vld [vmem:[#allocation17] ss:$0 sm:$0xff] }
 0x4f7   :  { %v2215_v4 = vmul.f32 %v3314_v63, %v2149_v3  ;;  %v3212_v6 = vpop.f32.mrb[29].mxu0  ;;  %v2309_v14 = vrot.slane %v2301_v60, %v3903_v29  ;;  %v2316_v16 = vrot.slane %v2302_v2, %v3903_v29  ;;  %v3282_v2 = vld [vmem:[#allocation16 + $0x8] sm:$0xff]  }
 0x4f8   :  { %v2152_v26 = vpop.f32.mrb[30].mxu0 }
 0x4f9   :  { %v2285_v61 = vcombine.low %v2213_v59, %v2215_v4  ;;  %v2286_v11 = vcombine.high %v2213_v59, %v2215_v4  ;;  %v3213_v12 = vpop.f32.mrb[31].mxu0 }
 0x4fb   :  { %v2293_v17 = vrot.slane %v2285_v61, %v3903_v29  ;;  %v2300_v42 = vrot.slane %v2286_v11, %v3903_v29 }
 0x4fd   :  { %v2317_v22 = vcombine.low %v2293_v17, %v2309_v14  ;;  %v2318_v23 = vcombine.high %v2293_v17, %v2309_v14  ;;  %v2333_v54 = vcombine.low %v2300_v42, %v2316_v16  ;;  %v2334_v24 = vcombine.high %v2300_v42, %v2316_v16 }
 0x4fe   :  { %v2550_v17 = vsel %vm331_vm1, %v3282_v2, 0 }
 0x4ff   :  { %v2325_v51 = vrot.slane %v2317_v22, %v3941_v40  ;;  %v2332_v25 = vrot.slane %v2318_v23, %v3941_v40  ;;  %v2341_v27 = vrot.slane %v2333_v54, %v3941_v40  ;;  %v2348_v28 = vrot.slane %v2334_v24, %v3941_v40  ;;  %3223 = vmatpush3.bf16.xpose.msra.mxu0 %v2550_v17 }
 0x501   :  { %v2349_v33 = vcombine.high %v2325_v51, %v3645_v0  ;;  %v2350_v30 = vcombine.high %v2332_v25, %v3645_v0  ;;  %v2351_v34 = vcombine.high %v2341_v27, %v3645_v0  ;;  %v2352_v31 = vcombine.high %v2348_v28, %v3645_v0 }
 0x503   :  { %v2361_v35 = vcombine.low %v2325_v51, %v2349_v33  ;;  %v2377_v36 = vcombine.low %v2332_v25, %v2350_v30  ;;  %v2429_v37 = vcombine.low %v2341_v27, %v2351_v34  ;;  %v2445_v38 = vcombine.low %v2348_v28, %v2352_v31 }
 0x505   :  { %v2368_v45 = vrot.slane %v2361_v35, %v3903_v29  ;;  %v2384_v46 = vrot.slane %v2377_v36, %v3903_v29  ;;  %v2436_v47 = vrot.slane %v2429_v37, %v3903_v29  ;;  %v2452_v0 = vrot.slane %v2445_v38, %v3903_v29 }
 0x507   :  { %v2386_v48 = vcombine.high %v2360_v39, %v2368_v45  ;;  %v2402_v49 = vcombine.high %v2376_v41, %v2384_v46  ;;  %v2454_v50 = vcombine.high %v2428_v43, %v2436_v47  ;;  %v2470_v52 = vcombine.high %v2444_v44, %v2452_v0 }
 0x508   :  { %v2385_v53 = vcombine.low %v2360_v39, %v2368_v45  ;;  %v2401_v55 = vcombine.low %v2376_v41, %v2384_v46  ;;  %v2453_v56 = vcombine.low %v2428_v43, %v2436_v47  ;;  %v2469_v57 = vcombine.low %v2444_v44, %v2452_v0  ;;  %v3319_v46 = vld [vmem:[#allocation2] sm:$0x3]  ;;  %v3320_v0 = vld [vmem:[#allocation2 + $0x2] sm:$0x3] }
 0x509   :  { %v2400_v58 = vrot.slane %v2386_v48, %v3941_v40  ;;  %v2416_v62 = vrot.slane %v2402_v49, %v3941_v40  ;;  %v2468_v63 = vrot.slane %v2454_v50, %v3941_v40  ;;  %v2484_v60 = vrot.slane %v2470_v52, %v3941_v40  ;;  %v3321_v52 = vld [vmem:[#allocation2 + $0x4] sm:$0x3] }
 0x50a   :  { %v2393_v3 = vrot.slane %v2385_v53, %v3941_v40  ;;  %v2409_v59 = vrot.slane %v2401_v55, %v3941_v40  ;;  %v2461_v4 = vrot.slane %v2453_v56, %v3941_v40  ;;  %v2477_v6 = vrot.slane %v2469_v57, %v3941_v40  ;;  %v3322_v56 = vld [vmem:[#allocation2 + $0x6] sm:$0x3] }
 0x50b   :  { %v2419_v7 = vcombine.low %v2400_v58, %v2416_v62  ;;  %v2487_v8 = vcombine.low %v2468_v63, %v2484_v60  ;;  %v2420_v9 = vcombine.high %v2400_v58, %v2416_v62  ;;  %v2488_v10 = vcombine.high %v2468_v63, %v2484_v60  ;;  %v3323_v62 = vld [vmem:[#allocation2 + $0x8] sm:$0x3]  ;;  %v3324_v60 = vld [vmem:[#allocation2 + $0xa] sm:$0x3] }
 0x50c   :  { %v2418_v26 = vcombine.high %v2393_v3, %v2409_v59  ;;  %v2485_v61 = vcombine.low %v2461_v4, %v2477_v6  ;;  %v2486_v11 = vcombine.high %v2461_v4, %v2477_v6  ;;  %v2417_v12 = vcombine.low %v2393_v3, %v2409_v59  ;;  %v3325_v3 = vld [vmem:[#allocation2 + $0xc] sm:$0x3]  ;;  %v3326_v6 = vld [vmem:[#allocation2 + $0xe] sm:$0x3] }
 0x50d   :  { %v3265_v14 = vpack.i.bf16 %v2487_v8, %v2419_v7  ;;  %v3270_v16 = vpack.i.bf16 %v2488_v10, %v2420_v9 }
 0x50e   :  { %v3260_v42 = vpack.i.bf16 %v2486_v11, %v2418_v26 }
 0x50f   :  { %3266 = vrot.lane.b32.xlu1 %v3265_v14, %s3653_s1 }
 0x510   :  { %3261 = vrot.lane.b32.xlu0 %v3260_v42, %s3654_s24  ;;  %v3656_v42 = vmov 269488144  }
 0x513   :  { %3271 = vrot.lane.b32.xlu1 %v3270_v16, %s3655_s5 }
 0x581   :  { %v3267_v40 = vpop.permute.xlu1 %3266 }
 0x582   :  { %v3262_v19 = vpop.permute.xlu0 %3261  ;;  %v3269_v15 = vunpack.i.h.bf16 %v3267_v40  ;;  %v3268_v20 = vunpack.i.l.bf16 %v3267_v40  ;;  %v2701_v40 = vunpack.c.l.s4 %v3656_v42  ;;  %v3055_v42 = vld [vmem:[#allocation20] ss:$0 sm:$0xff] }
 0x583   :  { %v3264_v21 = vunpack.i.h.bf16 %v3262_v19  ;;  %v3263_v22 = vunpack.i.l.bf16 %v3262_v19  ;;  %v3657_v19 = vmov 842150450  }
 0x585   :  { %v2514_v23 = vsel %vm1367_vm2, %v2485_v61, %v3264_v21  ;;  %v2513_v54 = vsel %vm1367_vm2, %v2417_v12, %v3263_v22  ;;  %v3272_v24 = vpop.permute.xlu1 %3271  ;;  %v3659_v22 = vmov 1987475062  }
 0x586   :  { %v3274_v51 = vunpack.i.h.bf16 %v3272_v24  ;;  %v3273_v25 = vunpack.i.l.bf16 %v3272_v24  ;;  %v2516_v27 = vsel %vm2515_vm4, %v2513_v54, %v3268_v20  ;;  %v2517_v28 = vsel %vm2515_vm4, %v2514_v23, %v3269_v15 }
 0x587   :  { %v2708_v15 = vunpack.c.l.s4 %v3657_v19  ;;  %v3658_v20 = vmov 1414812756   ;;  %v2722_v23 = vunpack.c.l.s4 %v3659_v22  ;;  %v2702_v54 = vunpack.c.0.s8 %v2701_v40 }
 0x588   :  { %v2519_v1 = vsel %vm2518_vm5, %v2516_v27, %v3273_v25  ;;  %v2520_v32 = vsel %vm2518_vm5, %v2517_v28, %v3274_v51  ;;  %v2715_v21 = vunpack.c.l.s4 %v3658_v20  ;;  %v2949_v19 = vcombine.high %v3055_v42, %v3055_v42 }
 0x589   :  { %v2521_v18 = vpack.c.bf16 %v2520_v32, %v2519_v1  ;;  %v2709_v24 = vunpack.c.0.s8 %v2708_v15  ;;  %v2723_v25 = vunpack.c.0.s8 %v2722_v23  ;;  %v4235_v27 = vsub.s32 %v2702_v54, %v3897_v13 }
 0x58a   :  { %v2716_v51 = vunpack.c.0.s8 %v2715_v21  ;;  %v2956_v22 = vrot.slane %v3055_v42, %v3903_v29  ;;  %v2963_v23 = vrot.slane %v2949_v19, %v3903_v29 }
 0x58b   :  { %3225 = vmatmul.mubr.msk.bf16.vlgmr.msra.gmra.mrb[32].mxu0 %vm331_vm1, %v2521_v18  ;;  %v4238_v28 = vsub.s32 %v2709_v24, %v3897_v13  ;;  %v4244_v32 = vsub.s32 %v2723_v25, %v3897_v13 }
 0x58c   :  { %v4241_v1 = vsub.s32 %v2716_v51, %v3897_v13 }
 0x65e   :  { %v2586_v33 = vpop.f32.mrb[32].mxu0 }
 0x65f   :  { %v2587_v30 = vadd.f32 %v3050_v5, %v2586_v33  ;;  %v3226_v34 = vpop.f32.mrb[33].mxu0 }
 0x660   :  { %v2589_v31 = vpop.f32.mrb[34].mxu0 }
 0x661   :  { %v2595_v35 = vcombine.high %v2587_v30, %v2587_v30  ;;  %v2602_v36 = vrot.slane %v2587_v30, %v3903_v29  ;;  %v2590_v37 = vadd.f32 %v3050_v5, %v2589_v31  ;;  %v3227_v38 = vpop.f32.mrb[35].mxu0 }
 0x663   :  { %v2609_v39 = vrot.slane %v2595_v35, %v3903_v29  ;;  %v2610_v41 = vcombine.high %v2602_v36, %v2602_v36  ;;  %v2612_v43 = vcombine.high %v2590_v37, %v2590_v37  ;;  %v2619_v44 = vrot.slane %v2590_v37, %v3903_v29 }
 0x664   :  { %v2637_v47 = vadd.f32 %v3319_v46, %v2602_v36 }
 0x665   :  { %v2611_v45 = vcombine.high %v2609_v39, %v2609_v39  ;;  %v2638_v48 = vadd.f32 %v3320_v0, %v2610_v41  ;;  %v2626_v49 = vrot.slane %v2612_v43, %v3903_v29  ;;  %v2627_v50 = vcombine.high %v2619_v44, %v2619_v44 }
 0x666   :  { %v2639_v53 = vadd.f32 %v3321_v52, %v2609_v39  ;;  %v2641_v63 = vadd.f32 %v3323_v62, %v2619_v44 }
 0x667   :  { %v2628_v55 = vcombine.high %v2626_v49, %v2626_v49  ;;  %v2640_v57 = vadd.f32 %v3322_v56, %v2611_v45  ;;  %v2653_v58 = vcombine.low %v2637_v47, %v2638_v48  ;;  %v2642_v2 = vadd.f32 %v3324_v60, %v2627_v50 }
 0x668   :  { %v2643_v59 = vadd.f32 %v3325_v3, %v2626_v49 }
 0x669   :  { %v2654_v4 = vcombine.low %v2639_v53, %v2640_v57  ;;  %v2644_v7 = vadd.f32 %v3326_v6, %v2628_v55  ;;  %v2670_v8 = vcombine.low %v2641_v63, %v2642_v2  ;;  %v2661_v9 = vrot.slane %v2653_v58, %v3903_v29 }
 0x66b   :  { %v2668_v10 = vrot.slane %v2654_v4, %v3903_v29  ;;  %v2671_v26 = vcombine.low %v2643_v59, %v2644_v7  ;;  %v2678_v11 = vrot.slane %v2670_v8, %v3903_v29 }
 0x66d   :  { %v2669_v61 = vcombine.low %v2661_v9, %v2668_v10  ;;  %v2685_v12 = vrot.slane %v2671_v26, %v3903_v29 }
 0x66f   :  { %v2689_v14 = vsel %vm331_vm1, %v2669_v61, 0.0  ;;  %v2686_v16 = vcombine.low %v2678_v11, %v2685_v12 }
 0x670   :  { %2690 = vadd.xlane.f32.xlu0 %v2689_v14 }
 0x671   :  { %v2692_v17 = vsel %vm331_vm1, %v2686_v16, 0.0  ;;  %v3054_v16 = vld [vmem:[#allocation19] ss:$0 sm:$0xff] }
 0x672   :  { %2693 = vadd.xlane.f32.xlu1 %v2692_v17  ;;  %v2915_v40 = vcombine.high %v3054_v16, %v3054_v16  ;;  %v2922_v15 = vrot.slane %v3054_v16, %v3903_v29 }
 0x674   :  { %v2929_v20 = vrot.slane %v2915_v40, %v3903_v29 }
 0x6fd   :  { %v2691_v18 = vpop.xlane.xlu0 %2690 }
 0x6fe   :  { %v2696_v5 = vmul.f32 0.03125, %v2691_v18  ;;  %v2930_v18 = vcombine.high %v2922_v15, %v2922_v15 }
 0x6ff   :  { %v2694_v33 = vpop.xlane.xlu1 %2693 }
 0x700   :  { %v2706_v30 = vrot.slane %v2696_v5, %v4235_v27  ;;  %v2713_v34 = vrot.slane %v2696_v5, %v4238_v28  ;;  %v2720_v31 = vrot.slane %v2696_v5, %v4241_v1  ;;  %v2727_v35 = vrot.slane %v2696_v5, %v4244_v32 }
 0x701   :  { %v2697_v36 = vmul.f32 0.03125, %v2694_v33  ;;  %v2931_v5 = vcombine.high %v2929_v20, %v2929_v20 }
 0x702   :  { %v2764_v37 = vsub.f32 %v2637_v47, %v2706_v30  ;;  %v2765_v38 = vsub.f32 %v2638_v48, %v2713_v34  ;;  %v2766_v39 = vsub.f32 %v2639_v53, %v2720_v31  ;;  %v2767_v41 = vsub.f32 %v2640_v57, %v2727_v35 }
 0x703   :  { %v2734_v43 = vrot.slane %v2697_v36, %v4235_v27  ;;  %v2741_v13 = vrot.slane %v2697_v36, %v4238_v28  ;;  %v2748_v44 = vrot.slane %v2697_v36, %v4241_v1  ;;  %v2755_v45 = vrot.slane %v2697_v36, %v4244_v32 }
 0x704   :  { %v2772_v46 = vmul.f32 %v2764_v37, %v2764_v37  ;;  %v2773_v0 = vmul.f32 %v2765_v38, %v2765_v38  ;;  %v2774_v49 = vmul.f32 %v2766_v39, %v2766_v39  ;;  %v2775_v50 = vmul.f32 %v2767_v41, %v2767_v41 }
 0x705   :  { %v2768_v52 = vsub.f32 %v2641_v63, %v2734_v43  ;;  %v2769_v55 = vsub.f32 %v2642_v2, %v2741_v13  ;;  %v2770_v56 = vsub.f32 %v2643_v59, %v2748_v44  ;;  %v2771_v58 = vsub.f32 %v2644_v7, %v2755_v45 }
 0x706   :  { %v2788_v47 = vcombine.low %v2772_v46, %v2773_v0  ;;  %v2789_v48 = vcombine.low %v2774_v49, %v2775_v50  ;;  %v2964_v36 = vcombine.high %v2956_v22, %v2956_v22  ;;  %v2965_v43 = vcombine.high %v2963_v23, %v2963_v23 }
 0x707   :  { %v2776_v53 = vmul.f32 %v2768_v52, %v2768_v52  ;;  %v2777_v57 = vmul.f32 %v2769_v55, %v2769_v55  ;;  %v2778_v62 = vmul.f32 %v2770_v56, %v2770_v56  ;;  %v2779_v60 = vmul.f32 %v2771_v58, %v2771_v58 }
 0x708   :  { %v2796_v3 = vrot.slane %v2788_v47, %v3903_v29  ;;  %v2803_v4 = vrot.slane %v2789_v48, %v3903_v29 }
 0x709   :  { %v2805_v6 = vcombine.low %v2776_v53, %v2777_v57  ;;  %v2806_v8 = vcombine.low %v2778_v62, %v2779_v60 }
 0x70a   :  { %v2804_v9 = vcombine.low %v2796_v3, %v2803_v4 }
 0x70b   :  { %v2813_v10 = vrot.slane %v2805_v6, %v3903_v29  ;;  %v2820_v63 = vrot.slane %v2806_v8, %v3903_v29 }
 0x70c   :  { %v2824_v2 = vsel %vm331_vm1, %v2804_v9, 0.0 }
 0x70d   :  { %2825 = vadd.xlane.f32.xlu0 %v2824_v2  ;;  %v2821_v59 = vcombine.low %v2813_v10, %v2820_v63 }
 0x70f   :  { %v2827_v7 = vsel %vm331_vm1, %v2821_v59, 0.0 }
 0x711   :  { %2828 = vadd.xlane.f32.xlu0 %v2827_v7 }
 0x79a   :  { %v2826_v26 = vpop.xlane.xlu0 %2825 }
 0x79b   :  { %v2830_v61 = vmul.f32 0.03125, %v2826_v26 }
 0x79d   :  { %v2832_v11 = vadd.f32 1e-05, %v2830_v61 }
 0x79e   :  { %v2829_v12 = vpop.xlane.xlu0 %2828 }
 0x79f   :  { %3315 = vrsqrt.f32 %v2832_v11  ;;  %v2831_v14 = vmul.f32 0.03125, %v2829_v12 }
 0x7a1   :  { %v2833_v17 = vadd.f32 1e-05, %v2831_v14 }
 0x7a3   :  { %3317 = vrsqrt.f32 %v2833_v17 }
 0x7a9   :  { %v3316_v21 = vpop.eup %3315 }
 0x7aa   :  { %v2844_v54 = vrot.slane %v3316_v21, %v4235_v27  ;;  %v2851_v24 = vrot.slane %v3316_v21, %v4238_v28  ;;  %v2858_v51 = vrot.slane %v3316_v21, %v4241_v1  ;;  %v2865_v25 = vrot.slane %v3316_v21, %v4244_v32 }
 0x7ac   :  { %v2902_v33 = vmul.f32 %v2844_v54, %v2764_v37  ;;  %v2903_v30 = vmul.f32 %v2851_v24, %v2765_v38  ;;  %v2904_v34 = vmul.f32 %v2858_v51, %v2766_v39  ;;  %v2905_v31 = vmul.f32 %v2865_v25, %v2767_v41 }
 0x7ad   :  { %v3318_v35 = vpop.eup %3317 }
 0x7ae   :  { %v2872_v29 = vrot.slane %v3318_v35, %v4235_v27  ;;  %v2879_v13 = vrot.slane %v3318_v35, %v4238_v28  ;;  %v2886_v44 = vrot.slane %v3318_v35, %v4241_v1  ;;  %v2893_v45 = vrot.slane %v3318_v35, %v4244_v32 }
 0x7af   :  { %v2936_v46 = vmul.f32 %v2922_v15, %v2902_v33  ;;  %v2937_v0 = vmul.f32 %v2930_v18, %v2903_v30  ;;  %v2938_v49 = vmul.f32 %v2929_v20, %v2904_v34  ;;  %v2939_v50 = vmul.f32 %v2931_v5, %v2905_v31 }
 0x7b0   :  { %v2906_v37 = vmul.f32 %v2872_v29, %v2768_v52  ;;  %v2907_v38 = vmul.f32 %v2879_v13, %v2769_v55  ;;  %v2908_v39 = vmul.f32 %v2886_v44, %v2770_v56  ;;  %v2909_v41 = vmul.f32 %v2893_v45, %v2771_v58 }
 0x7b1   :  { %v2970_v47 = vadd.f32 %v2956_v22, %v2936_v46  ;;  %v2971_v48 = vadd.f32 %v2964_v36, %v2937_v0  ;;  %v2972_v53 = vadd.f32 %v2963_v23, %v2938_v49  ;;  %v2973_v57 = vadd.f32 %v2965_v43, %v2939_v50 }
 0x7b2   :  { %v2940_v27 = vmul.f32 %v2922_v15, %v2906_v37  ;;  %v2941_v28 = vmul.f32 %v2930_v18, %v2907_v38  ;;  %v2942_v62 = vmul.f32 %v2929_v20, %v2908_v39  ;;  %v2943_v1 = vmul.f32 %v2931_v5, %v2909_v41 }
 0x7b3   :  { %2979 = vst.msk [vmem:[#allocation22] sm:$0x3] %vm2978_vm6, %v2970_v47  ;;  %2980 = vst.msk [vmem:[#allocation22 + $0x2] sm:$0x3] %vm2978_vm6, %v2971_v48 }
 0x7b4   :  { %2981 = vst.msk [vmem:[#allocation22 + $0x4] sm:$0x3] %vm2978_vm6, %v2972_v53  ;;  %2982 = vst.msk [vmem:[#allocation22 + $0x6] sm:$0x3] %vm2978_vm6, %v2973_v57  ;;  %v2974_v32 = vadd.f32 %v2956_v22, %v2940_v27  ;;  %v2975_v52 = vadd.f32 %v2964_v36, %v2941_v28  ;;  %v2976_v55 = vadd.f32 %v2963_v23, %v2942_v62 }
 0x7b5   :  { %v2977_v56 = vadd.f32 %v2965_v43, %v2943_v1 }
 0x7b6   :  { %2983 = vst.msk [vmem:[#allocation22 + $0x8] sm:$0x3] %vm2978_vm6, %v2974_v32  ;;  %2984 = vst.msk [vmem:[#allocation22 + $0xa] sm:$0x3] %vm2978_vm6, %v2975_v52 }
 0x7b7   :  { %2985 = vst.msk [vmem:[#allocation22 + $0xc] sm:$0x3] %vm2978_vm6, %v2976_v55  ;;  %2986 = vst.msk [vmem:[#allocation22 + $0xe] sm:$0x3] %vm2978_vm6, %v2977_v56 }
 0x7b8   :  { %3602 = shalt.err (!%p3599_p2)
}
 0x7b9   :  { %s3603_s4 = scalar_lea.hbm %s4307_s12, 256 }
 0x7ba   :  { %p3604_p3 = scmp.ne.s32.totalorder %s4307_s12, %s3603_s4  ;;  %p3607_p4 = scmp.lt.u32.totalorder %s3603_s4, %s4307_s12 }
 0x7bc   :  { %p3609_p5 = pnand %p3607_p4, %p3604_p3 }
 0x7be   :  { %3612 = shalt.err (!%p3609_p5)
}
 0x7bf   :  { %2998 = dma.vmem_to_hbm [thread:$0]  %s2993_s0, 256, %s4307_s12, [#allocation4], %s3630_s13, %s3630_s13, %s3631_s14  }
 0x7c0   :  { %3627 = dma.done.wait [#allocation4], 256  }
 0x7c1   :  { %3628 = vsyncadd [#allocation4], 4294967040 }
 0x7c2   :  { %3002 = vsyncpa [#allocation3], 1 }
 0x7c3   :  { %3003 = vsyncpa [#allocation6], 1 }
 0x7c4   :  { %3004 = vsyncpa [#allocation9], 1 }
 0x7c5   :  { %3005 = vsyncpa [#allocation12], 1 }
 0x7c6   :  { %3006 = vsyncpa [#allocation15], 1 }
 0x7c7   :  { %3007 = vsyncpa [#allocation18], 1 }
 0x7c8   :  { %3008 = vsyncpa [#allocation21], 1 }
 0x7c9   :  { %3009 = vsyncpa [#allocation4], 1 }

</bundles_post_ra>
